<compile_context>
chip_gen: v7x
topology: tpu7x:2x2x1
jax: 0.10.0
libtpu: 0.0.40
codegen_flags: <defaults>
</compile_context>

<pallas_src>
import jax
import jax.numpy as jnp
from jax.experimental import pallas as pl
from jax.experimental.pallas import tpu as pltpu


# ------------------------------ fused kernel --------------------------------

def _lenet_kernel(lhs1_ref, w1_ref, b1_ref, w2_hbm, b2_ref,
                  wfc1_hbm, bfc1_ref, wfc2_ref, bfc2_ref, wfc3_ref, bfc3_ref,
                  o_ref, w2_vmem, wfc1_vmem, dma_sem):
    f32, bf16 = jnp.float32, jnp.bfloat16
    B = o_ref.shape[0]

    # Start DMAs for the later-stage weights; they overlap with conv1 compute.
    w2_cp = pltpu.make_async_copy(w2_hbm, w2_vmem, dma_sem.at[0])
    w2_cp.start()
    wfc1_cp = pltpu.make_async_copy(wfc1_hbm, wfc1_vmem, dma_sem.at[1])
    wfc1_cp.start()

    # ---- conv1 + ReLU + 2x2 max-pool: one matmul --------------------------
    # lhs1 rows:  r*(B*8) + b*8 + m  ->  conv1 output row 4m+r of batch b
    # lhs1 lanes: kh*32 + w_in       ->  x[b, 4m+r+kh, w_in]
    # out cols:   (w_out%2)*128 + (w_out//2)*6 + c
    out1 = jnp.dot(lhs1_ref[...], w1_ref[...], preferred_element_type=f32)
    nb = B * 8
    b1 = b1_ref[...]
    e = jnp.maximum(out1[0 * nb:1 * nb], out1[1 * nb:2 * nb])      # rows 4m,4m+1
    o = jnp.maximum(out1[2 * nb:3 * nb], out1[3 * nb:4 * nb])      # rows 4m+2,4m+3
    p1e = jnp.maximum(jnp.maximum(e[:, :128], e[:, 128:]) + b1, 0.0)
    p1o = jnp.maximum(jnp.maximum(o[:, :128], o[:, 128:]) + b1, 0.0)
    # p1e/p1o: (B*8, 128); row b*8+m = pooled1 row 2m / 2m+1, col = w*6 + c.

    # ---- conv2 + ReLU + 2x2 max-pool: one matmul (kh folded into K) -------
    # LHS rows: s*(B*5) + b*5 + t -> conv2 output row 2t+s of batch b
    # LHS lanes kh*128 + (w*6+c)  -> pooled1 row (2t+s+kh) of batch b
    def piece(j):                      # j = s + kh, pooled1 row 2*(t+j//2)+(j%2)
        src = p1e if (j % 2 == 0) else p1o
        off = j // 2
        return jnp.concatenate(
            [src[b * 8 + off: b * 8 + off + 5, :] for b in range(B)], axis=0)
    pieces = [piece(j) for j in range(6)]                          # 6 x (B*5,128)
    lhs2 = jnp.concatenate(
        [jnp.concatenate(pieces[0:5], axis=1),                     # parity s=0
         jnp.concatenate(pieces[1:6], axis=1)], axis=0).astype(bf16)

    w2_cp.wait()
    out2 = jnp.dot(lhs2, w2_vmem[...], preferred_element_type=f32)  # (2*B*5,256)
    nr = B * 5
    m2 = jnp.maximum(out2[:nr], out2[nr:])                          # pool rows
    p2 = jnp.maximum(jnp.maximum(m2[:, :128], m2[:, 128:]) + b2_ref[...], 0.0)
    # p2: (B*5, 128); row b*5+t = pooled2 row t, col = w*16 + c (valid < 80).

    # ---- fc1 + ReLU (5 pooled rows folded into K), batched over B ----------
    lhs_fc1 = jnp.concatenate(
        [jnp.concatenate([p2[b * 5 + t: b * 5 + t + 1, :] for t in range(5)],
                         axis=1) for b in range(B)], axis=0).astype(bf16)
    wfc1_cp.wait()
    h1 = jnp.maximum(
        jnp.dot(lhs_fc1, wfc1_vmem[...], preferred_element_type=f32)
        + bfc1_ref[...], 0.0)                                       # (B, 128)

    # ---- fc2 + ReLU, fc3 ---------------------------------------------------
    h2 = jnp.maximum(
        jnp.dot(h1.astype(bf16), wfc2_ref[...], preferred_element_type=f32)
        + bfc2_ref[...], 0.0)
    o_ref[...] = (jnp.dot(h2.astype(bf16), wfc3_ref[...],
                          preferred_element_type=f32) + bfc3_ref[...])


# ------------------------- one-time parameter prep ---------------------------

def init_params(key):
    ks = jax.random.split(key, 10)

    def u(k, shape, fan_in):
        bound = 1.0 / jnp.sqrt(jnp.float32(fan_in))
        return jax.random.uniform(k, shape, jnp.float32, -bound, bound)

    return {
        "conv1_w": u(ks[0], (6, 1, 5, 5), 1 * 5 * 5),
        "conv1_b": u(ks[1], (6,), 1 * 5 * 5),
        "conv2_w": u(ks[2], (16, 6, 5, 5), 6 * 5 * 5),
        "conv2_b": u(ks[3], (16,), 6 * 5 * 5),
        "fc1_w": u(ks[4], (120, 400), 400),
        "fc1_b": u(ks[5], (120,), 400),
        "fc2_w": u(ks[6], (84, 120), 120),
        "fc2_b": u(ks[7], (84,), 120),
        "fc3_w": u(ks[8], (10, 84), 84),
        "fc3_b": u(ks[9], (10,), 84),
    }


def prepare_params(params):
    """One-time transform of torch-layout weights into the kernel layout."""
    f32, bf16 = jnp.float32, jnp.bfloat16
    w1, b1 = params["conv1_w"], params["conv1_b"]   # (6,1,5,5), (6,)
    w2, b2 = params["conv2_w"], params["conv2_b"]   # (16,6,5,5), (16,)

    # conv1 banded weights stacked along K: (160, 256).
    # row kh*32 + w_in  ->  col (w_out%2)*128 + (w_out//2)*6 + c, w_in = w_out+kw
    wo, co = jnp.arange(28), jnp.arange(6)
    col1 = (wo[:, None] % 2) * 128 + (wo[:, None] // 2) * 6 + co[None, :]
    w1cat = jnp.zeros((160, 256), f32)
    for kh in range(5):
        for kw in range(5):
            w1cat = w1cat.at[kh * 32 + (wo + kw)[:, None], col1].add(
                w1[:, 0, kh, kw][None, :])
    b1p = jnp.zeros((1, 128), f32).at[0, :84].set(jnp.tile(b1, 14))

    # conv2 banded weights stacked along K: (640, 256).
    # row kh*128 + (w_in*6 + ci)  ->  col (w_out%2)*128 + (w_out//2)*16 + co
    wo2, co2, ci = jnp.arange(10), jnp.arange(16), jnp.arange(6)
    col2 = (wo2[:, None] % 2) * 128 + (wo2[:, None] // 2) * 16 + co2[None, :]
    w2cat = jnp.zeros((640, 256), f32)
    for kh in range(5):
        for kw in range(5):
            rows = kh * 128 + (wo2 + kw)[:, None] * 6 + ci[None, :]   # (10, 6)
            vals = w2[:, :, kh, kw].T                                 # (ci, co)
            w2cat = w2cat.at[rows[:, :, None], col2[:, None, :]].add(
                vals[None, :, :])
    b2p = jnp.zeros((1, 128), f32).at[0, :80].set(jnp.tile(b2, 5))

    # fc1: permute torch (c,h,w) flatten into the kernel's (h, w*16+c) layout,
    # fold h into K -> (640, 128).
    wf1 = params["fc1_w"].reshape(120, 16, 5, 5)                 # (n, c, h, w)
    wf1 = jnp.transpose(wf1, (2, 3, 1, 0)).reshape(5, 80, 120)   # (h, w*16+c, n)
    wfc1 = jnp.zeros((5, 128, 128), f32).at[:, :80, :120].set(wf1).reshape(640, 128)
    bfc1 = jnp.zeros((1, 128), f32).at[0, :120].set(params["fc1_b"])

    wfc2 = jnp.zeros((128, 128), f32).at[:120, :84].set(params["fc2_w"].T)
    bfc2 = jnp.zeros((1, 128), f32).at[0, :84].set(params["fc2_b"])
    wfc3 = jnp.zeros((128, 128), f32).at[:84, :10].set(params["fc3_w"].T)
    bfc3 = jnp.zeros((1, 128), f32).at[0, :10].set(params["fc3_b"])

    return {"w1": w1cat.astype(bf16), "b1": b1p,
            "w2": w2cat.astype(bf16), "b2": b2p,
            "wfc1": wfc1.astype(bf16), "bfc1": bfc1,
            "wfc2": wfc2.astype(bf16), "bfc2": bfc2,
            "wfc3": wfc3.astype(bf16), "bfc3": bfc3}


# ------------------------------ forward pass ---------------------------------

@jax.jit
def net_forward(prep, x_nchw):
    B = x_nchw.shape[0]
    # Row-im2col of the input so conv1's kh taps live in the K dimension:
    # lhs1[r*(B*8) + b*8 + m, kh*32 + w] = x[b, 0, 4m+r+kh, w]     (m=7 padded)
    x2 = x_nchw[:, 0]                                             # (B, 32, 32)
    taps = jnp.arange(28)[:, None] + jnp.arange(5)[None, :]       # (28, 5)
    xi = x2[:, taps, :]                                           # (B,28,5,32)
    xi = xi.reshape(B, 7, 4, 160)                                 # [b, m, r, kh*32+w]
    xi = jnp.transpose(xi, (2, 0, 1, 3))                          # (4, B, 7, 160)
    lhs1 = (jnp.zeros((4, B, 8, 160), jnp.bfloat16)
            .at[:, :, :7, :].set(xi.astype(jnp.bfloat16))
            .reshape(4 * B * 8, 160))

    vmem = pl.BlockSpec(memory_space=pltpu.MemorySpace.VMEM)
    hbm = pl.BlockSpec(memory_space=pl.ANY)

    out = pl.pallas_call(
        _lenet_kernel,
        out_shape=jax.ShapeDtypeStruct((B, 128), jnp.float32),
        in_specs=[vmem, vmem, vmem, hbm, vmem, hbm, vmem, vmem, vmem, vmem, vmem],
        out_specs=vmem,
        scratch_shapes=[pltpu.VMEM((640, 256), jnp.bfloat16),   # conv2 weights
                        pltpu.VMEM((640, 128), jnp.bfloat16),   # fc1 weights
                        pltpu.SemaphoreType.DMA((2,))],
        cost_estimate=pl.CostEstimate(flops=12_255_232, transcendentals=0,
                                      bytes_accessed=663_040),
    )(lhs1, prep["w1"], prep["b1"], prep["w2"], prep["b2"],
      prep["wfc1"], prep["bfc1"], prep["wfc2"], prep["bfc2"],
      prep["wfc3"], prep["bfc3"])
    return out[:, :10]


# --------------------------- pure-JAX reference ------------------------------

def _reference_forward(params, x_nchw):
    hp = jax.lax.Precision.HIGHEST

    def conv_relu(x, w, b):
        B, H, W, Ci = x.shape
        Co, _, KH, KW = w.shape
        Ho, Wo = H - KH + 1, W - KW + 1
        cols = [x[:, kh:kh + Ho, kw:kw + Wo, :]
                for kh in range(KH) for kw in range(KW)]
        patches = jnp.concatenate(cols, -1).reshape(B * Ho * Wo, KH * KW * Ci)
        wt = jnp.transpose(w, (2, 3, 1, 0)).reshape(KH * KW * Ci, Co)
        y = jnp.dot(patches, wt, precision=hp) + b
        return jnp.maximum(y, 0.0).reshape(B, Ho, Wo, Co)

    def pool(x):
        return jnp.maximum(
            jnp.maximum(x[:, 0::2, 0::2], x[:, 0::2, 1::2]),
            jnp.maximum(x[:, 1::2, 0::2], x[:, 1::2, 1::2]))

    x = jnp.transpose(x_nchw, (0, 2, 3, 1))
    x = pool(conv_relu(x, params["conv1_w"], params["conv1_b"]))
    x = pool(conv_relu(x, params["conv2_w"], params["conv2_b"]))
    x = jnp.transpose(x, (0, 3, 1, 2)).reshape(x.shape[0], -1)   # torch view order
    x = jnp.maximum(jnp.dot(x, params["fc1_w"].T, precision=hp)
                    + params["fc1_b"], 0.0)
    x = jnp.maximum(jnp.dot(x, params["fc2_w"].T, precision=hp)
                    + params["fc2_b"], 0.0)
    return jnp.dot(x, params["fc3_w"].T, precision=hp) + params["fc3_b"]


if __name__ == "__main__":
    key = jax.random.PRNGKey(0)
    pkey, xkey = jax.random.split(key)
    params = init_params(pkey)
    prep = prepare_params(params)             # one-time weight transform
    # LeNet requires 32x32 single-channel input so the flatten is 16*5*5.
    x = jax.random.normal(xkey, (2, 1, 32, 32), dtype=jnp.float32)

    out = jax.block_until_ready(net_forward(prep, x))
    assert out.shape == (2, 10) and out.dtype == jnp.float32

    ref = jax.block_until_ready(_reference_forward(params, x))
    err = float(jnp.max(jnp.abs(out - ref)))
    assert err < 1e-2, f"mismatch vs reference: max abs err = {err}"
    print("KERNEL_OK")
</pallas_src>

<mosaic_0001>
module attributes {stable_mosaic.version = 11 : i64} {
  func.func @_lenet_kernel(%arg0: memref<64x160xbf16, #tpu.memory_space<vmem>>, %arg1: memref<160x256xbf16, #tpu.memory_space<vmem>>, %arg2: memref<1x128xf32, #tpu.memory_space<vmem>>, %arg3: memref<640x256xbf16, #tpu.memory_space<any>>, %arg4: memref<1x128xf32, #tpu.memory_space<vmem>>, %arg5: memref<640x128xbf16, #tpu.memory_space<any>>, %arg6: memref<1x128xf32, #tpu.memory_space<vmem>>, %arg7: memref<128x128xbf16, #tpu.memory_space<vmem>>, %arg8: memref<1x128xf32, #tpu.memory_space<vmem>>, %arg9: memref<128x128xbf16, #tpu.memory_space<vmem>>, %arg10: memref<1x128xf32, #tpu.memory_space<vmem>>, %arg11: memref<2x128xf32, #tpu.memory_space<vmem>>, %arg12: memref<640x256xbf16, #tpu.memory_space<vmem>>, %arg13: memref<640x128xbf16, #tpu.memory_space<vmem>>, %arg14: memref<2x!tpu.dma_semaphore, #tpu.memory_space<semaphore_mem>>) attributes {dimension_semantics = [], scalar_prefetch = 0 : i64, scratch_operands = 3 : i64, tpu.core_type = #tpu.core_type<tc>} {
    %c0_i32 = arith.constant 0 : i32
    %0 = tpu.memref_slice %arg14[%c0_i32] : memref<2x!tpu.dma_semaphore, #tpu.memory_space<semaphore_mem>> -> memref<1x!tpu.dma_semaphore, #tpu.memory_space<semaphore_mem>>
    %1 = tpu.memref_squeeze %0 : memref<1x!tpu.dma_semaphore, #tpu.memory_space<semaphore_mem>> -> memref<!tpu.dma_semaphore, #tpu.memory_space<semaphore_mem>>
    tpu.enqueue_dma source(%arg3 : memref<640x256xbf16, #tpu.memory_space<any>>) target(%arg12 : memref<640x256xbf16, #tpu.memory_space<vmem>>) target_semaphore(%1 : memref<!tpu.dma_semaphore, #tpu.memory_space<semaphore_mem>>)
    %c1_i32 = arith.constant 1 : i32
    %2 = tpu.memref_slice %arg14[%c1_i32] : memref<2x!tpu.dma_semaphore, #tpu.memory_space<semaphore_mem>> -> memref<1x!tpu.dma_semaphore, #tpu.memory_space<semaphore_mem>>
    %3 = tpu.memref_squeeze %2 : memref<1x!tpu.dma_semaphore, #tpu.memory_space<semaphore_mem>> -> memref<!tpu.dma_semaphore, #tpu.memory_space<semaphore_mem>>
    tpu.enqueue_dma source(%arg5 : memref<640x128xbf16, #tpu.memory_space<any>>) target(%arg13 : memref<640x128xbf16, #tpu.memory_space<vmem>>) target_semaphore(%3 : memref<!tpu.dma_semaphore, #tpu.memory_space<semaphore_mem>>)
    %c0 = arith.constant 0 : index
    %c0_0 = arith.constant 0 : index
    %4 = vector.load %arg0[%c0, %c0_0] : memref<64x160xbf16, #tpu.memory_space<vmem>>, vector<64x160xbf16>
    %c0_1 = arith.constant 0 : index
    %c0_2 = arith.constant 0 : index
    %5 = vector.load %arg1[%c0_1, %c0_2] : memref<160x256xbf16, #tpu.memory_space<vmem>>, vector<160x256xbf16>
    %cst = arith.constant dense<0.000000e+00> : vector<64x256xf32>
    %6 = tpu.matmul %4, %5, %cst {dimension_numbers = #tpu.dot_dimension_numbers<[1], [0], [0], [1], [0, 0, 1, 1], [], []>} : vector<64x160xbf16>, vector<160x256xbf16>, vector<64x256xf32> -> vector<64x256xf32>
    %c0_3 = arith.constant 0 : index
    %c0_4 = arith.constant 0 : index
    %7 = vector.load %arg2[%c0_3, %c0_4] : memref<1x128xf32, #tpu.memory_space<vmem>>, vector<1x128xf32>
    %8 = vector.extract_strided_slice %6 {offsets = [0, 0], sizes = [16, 256], strides = [1, 1]} : vector<64x256xf32> to vector<16x256xf32>
    %9 = vector.extract_strided_slice %6 {offsets = [16, 0], sizes = [16, 256], strides = [1, 1]} : vector<64x256xf32> to vector<16x256xf32>
    %10 = arith.maximumf %8, %9 : vector<16x256xf32>
    %11 = vector.extract_strided_slice %6 {offsets = [32, 0], sizes = [16, 256], strides = [1, 1]} : vector<64x256xf32> to vector<16x256xf32>
    %12 = vector.extract_strided_slice %6 {offsets = [48, 0], sizes = [16, 256], strides = [1, 1]} : vector<64x256xf32> to vector<16x256xf32>
    %13 = arith.maximumf %11, %12 : vector<16x256xf32>
    %14 = vector.extract_strided_slice %10 {offsets = [0, 0], sizes = [16, 128], strides = [1, 1]} : vector<16x256xf32> to vector<16x128xf32>
    %15 = vector.extract_strided_slice %10 {offsets = [0, 128], sizes = [16, 128], strides = [1, 1]} : vector<16x256xf32> to vector<16x128xf32>
    %16 = arith.maximumf %14, %15 : vector<16x128xf32>
    %17 = vector.broadcast %7 : vector<1x128xf32> to vector<16x128xf32>
    %18 = arith.addf %16, %17 : vector<16x128xf32>
    %cst_5 = arith.constant 0.000000e+00 : f32
    %19 = vector.broadcast %cst_5 : f32 to vector<16x128xf32>
    %20 = arith.maximumf %18, %19 : vector<16x128xf32>
    %21 = vector.extract_strided_slice %13 {offsets = [0, 0], sizes = [16, 128], strides = [1, 1]} : vector<16x256xf32> to vector<16x128xf32>
    %22 = vector.extract_strided_slice %13 {offsets = [0, 128], sizes = [16, 128], strides = [1, 1]} : vector<16x256xf32> to vector<16x128xf32>
    %23 = arith.maximumf %21, %22 : vector<16x128xf32>
    %24 = vector.broadcast %7 : vector<1x128xf32> to vector<16x128xf32>
    %25 = arith.addf %23, %24 : vector<16x128xf32>
    %cst_6 = arith.constant 0.000000e+00 : f32
    %26 = vector.broadcast %cst_6 : f32 to vector<16x128xf32>
    %27 = arith.maximumf %25, %26 : vector<16x128xf32>
    %28 = vector.extract_strided_slice %20 {offsets = [0, 0], sizes = [5, 128], strides = [1, 1]} : vector<16x128xf32> to vector<5x128xf32>
    %29 = vector.extract_strided_slice %20 {offsets = [8, 0], sizes = [5, 128], strides = [1, 1]} : vector<16x128xf32> to vector<5x128xf32>
    %30 = tpu.concatenate %28, %29 in 0 : vector<5x128xf32>, vector<5x128xf32> -> vector<10x128xf32>
    %31 = vector.extract_strided_slice %27 {offsets = [0, 0], sizes = [5, 128], strides = [1, 1]} : vector<16x128xf32> to vector<5x128xf32>
    %32 = vector.extract_strided_slice %27 {offsets = [8, 0], sizes = [5, 128], strides = [1, 1]} : vector<16x128xf32> to vector<5x128xf32>
    %33 = tpu.concatenate %31, %32 in 0 : vector<5x128xf32>, vector<5x128xf32> -> vector<10x128xf32>
    %34 = vector.extract_strided_slice %20 {offsets = [1, 0], sizes = [5, 128], strides = [1, 1]} : vector<16x128xf32> to vector<5x128xf32>
    %35 = vector.extract_strided_slice %20 {offsets = [9, 0], sizes = [5, 128], strides = [1, 1]} : vector<16x128xf32> to vector<5x128xf32>
    %36 = tpu.concatenate %34, %35 in 0 : vector<5x128xf32>, vector<5x128xf32> -> vector<10x128xf32>
    %37 = vector.extract_strided_slice %27 {offsets = [1, 0], sizes = [5, 128], strides = [1, 1]} : vector<16x128xf32> to vector<5x128xf32>
    %38 = vector.extract_strided_slice %27 {offsets = [9, 0], sizes = [5, 128], strides = [1, 1]} : vector<16x128xf32> to vector<5x128xf32>
    %39 = tpu.concatenate %37, %38 in 0 : vector<5x128xf32>, vector<5x128xf32> -> vector<10x128xf32>
    %40 = vector.extract_strided_slice %20 {offsets = [2, 0], sizes = [5, 128], strides = [1, 1]} : vector<16x128xf32> to vector<5x128xf32>
    %41 = vector.extract_strided_slice %20 {offsets = [10, 0], sizes = [5, 128], strides = [1, 1]} : vector<16x128xf32> to vector<5x128xf32>
    %42 = tpu.concatenate %40, %41 in 0 : vector<5x128xf32>, vector<5x128xf32> -> vector<10x128xf32>
    %43 = vector.extract_strided_slice %27 {offsets = [2, 0], sizes = [5, 128], strides = [1, 1]} : vector<16x128xf32> to vector<5x128xf32>
    %44 = vector.extract_strided_slice %27 {offsets = [10, 0], sizes = [5, 128], strides = [1, 1]} : vector<16x128xf32> to vector<5x128xf32>
    %45 = tpu.concatenate %43, %44 in 0 : vector<5x128xf32>, vector<5x128xf32> -> vector<10x128xf32>
    %46 = tpu.concatenate %30, %33, %36, %39, %42 in 1 : vector<10x128xf32>, vector<10x128xf32>, vector<10x128xf32>, vector<10x128xf32>, vector<10x128xf32> -> vector<10x640xf32>
    %47 = tpu.concatenate %33, %36, %39, %42, %45 in 1 : vector<10x128xf32>, vector<10x128xf32>, vector<10x128xf32>, vector<10x128xf32>, vector<10x128xf32> -> vector<10x640xf32>
    %48 = tpu.concatenate %46, %47 in 0 : vector<10x640xf32>, vector<10x640xf32> -> vector<20x640xf32>
    %49 = arith.truncf %48 : vector<20x640xf32> to vector<20x640xbf16>
    %c0_i32_7 = arith.constant 0 : i32
    %50 = tpu.memref_slice %arg14[%c0_i32_7] : memref<2x!tpu.dma_semaphore, #tpu.memory_space<semaphore_mem>> -> memref<1x!tpu.dma_semaphore, #tpu.memory_space<semaphore_mem>>
    %51 = tpu.memref_squeeze %50 : memref<1x!tpu.dma_semaphore, #tpu.memory_space<semaphore_mem>> -> memref<!tpu.dma_semaphore, #tpu.memory_space<semaphore_mem>>
    tpu.wait_dma2 semaphore(%51 : memref<!tpu.dma_semaphore, #tpu.memory_space<semaphore_mem>>) src(%arg3 : memref<640x256xbf16, #tpu.memory_space<any>>) dst(%arg12 : memref<640x256xbf16, #tpu.memory_space<vmem>>)
    %c0_8 = arith.constant 0 : index
    %c0_9 = arith.constant 0 : index
    %52 = vector.load %arg12[%c0_8, %c0_9] : memref<640x256xbf16, #tpu.memory_space<vmem>>, vector<640x256xbf16>
    %cst_10 = arith.constant dense<0.000000e+00> : vector<20x256xf32>
    %53 = tpu.matmul %49, %52, %cst_10 {dimension_numbers = #tpu.dot_dimension_numbers<[1], [0], [0], [1], [0, 0, 1, 1], [], []>} : vector<20x640xbf16>, vector<640x256xbf16>, vector<20x256xf32> -> vector<20x256xf32>
    %54 = vector.extract_strided_slice %53 {offsets = [0, 0], sizes = [10, 256], strides = [1, 1]} : vector<20x256xf32> to vector<10x256xf32>
    %55 = vector.extract_strided_slice %53 {offsets = [10, 0], sizes = [10, 256], strides = [1, 1]} : vector<20x256xf32> to vector<10x256xf32>
    %56 = arith.maximumf %54, %55 : vector<10x256xf32>
    %57 = vector.extract_strided_slice %56 {offsets = [0, 0], sizes = [10, 128], strides = [1, 1]} : vector<10x256xf32> to vector<10x128xf32>
    %58 = vector.extract_strided_slice %56 {offsets = [0, 128], sizes = [10, 128], strides = [1, 1]} : vector<10x256xf32> to vector<10x128xf32>
    %59 = arith.maximumf %57, %58 : vector<10x128xf32>
    %c0_11 = arith.constant 0 : index
    %c0_12 = arith.constant 0 : index
    %60 = vector.load %arg4[%c0_11, %c0_12] : memref<1x128xf32, #tpu.memory_space<vmem>>, vector<1x128xf32>
    %61 = vector.broadcast %60 : vector<1x128xf32> to vector<10x128xf32>
    %62 = arith.addf %59, %61 : vector<10x128xf32>
    %cst_13 = arith.constant 0.000000e+00 : f32
    %63 = vector.broadcast %cst_13 : f32 to vector<10x128xf32>
    %64 = arith.maximumf %62, %63 : vector<10x128xf32>
    %65 = vector.extract_strided_slice %64 {offsets = [0, 0], sizes = [1, 128], strides = [1, 1]} : vector<10x128xf32> to vector<1x128xf32>
    %66 = vector.extract_strided_slice %64 {offsets = [1, 0], sizes = [1, 128], strides = [1, 1]} : vector<10x128xf32> to vector<1x128xf32>
    %67 = vector.extract_strided_slice %64 {offsets = [2, 0], sizes = [1, 128], strides = [1, 1]} : vector<10x128xf32> to vector<1x128xf32>
    %68 = vector.extract_strided_slice %64 {offsets = [3, 0], sizes = [1, 128], strides = [1, 1]} : vector<10x128xf32> to vector<1x128xf32>
    %69 = vector.extract_strided_slice %64 {offsets = [4, 0], sizes = [1, 128], strides = [1, 1]} : vector<10x128xf32> to vector<1x128xf32>
    %70 = tpu.concatenate %65, %66, %67, %68, %69 in 1 : vector<1x128xf32>, vector<1x128xf32>, vector<1x128xf32>, vector<1x128xf32>, vector<1x128xf32> -> vector<1x640xf32>
    %71 = vector.extract_strided_slice %64 {offsets = [5, 0], sizes = [1, 128], strides = [1, 1]} : vector<10x128xf32> to vector<1x128xf32>
    %72 = vector.extract_strided_slice %64 {offsets = [6, 0], sizes = [1, 128], strides = [1, 1]} : vector<10x128xf32> to vector<1x128xf32>
    %73 = vector.extract_strided_slice %64 {offsets = [7, 0], sizes = [1, 128], strides = [1, 1]} : vector<10x128xf32> to vector<1x128xf32>
    %74 = vector.extract_strided_slice %64 {offsets = [8, 0], sizes = [1, 128], strides = [1, 1]} : vector<10x128xf32> to vector<1x128xf32>
    %75 = vector.extract_strided_slice %64 {offsets = [9, 0], sizes = [1, 128], strides = [1, 1]} : vector<10x128xf32> to vector<1x128xf32>
    %76 = tpu.concatenate %71, %72, %73, %74, %75 in 1 : vector<1x128xf32>, vector<1x128xf32>, vector<1x128xf32>, vector<1x128xf32>, vector<1x128xf32> -> vector<1x640xf32>
    %77 = tpu.concatenate %70, %76 in 0 : vector<1x640xf32>, vector<1x640xf32> -> vector<2x640xf32>
    %78 = arith.truncf %77 : vector<2x640xf32> to vector<2x640xbf16>
    %c1_i32_14 = arith.constant 1 : i32
    %79 = tpu.memref_slice %arg14[%c1_i32_14] : memref<2x!tpu.dma_semaphore, #tpu.memory_space<semaphore_mem>> -> memref<1x!tpu.dma_semaphore, #tpu.memory_space<semaphore_mem>>
    %80 = tpu.memref_squeeze %79 : memref<1x!tpu.dma_semaphore, #tpu.memory_space<semaphore_mem>> -> memref<!tpu.dma_semaphore, #tpu.memory_space<semaphore_mem>>
    tpu.wait_dma2 semaphore(%80 : memref<!tpu.dma_semaphore, #tpu.memory_space<semaphore_mem>>) src(%arg5 : memref<640x128xbf16, #tpu.memory_space<any>>) dst(%arg13 : memref<640x128xbf16, #tpu.memory_space<vmem>>)
    %c0_15 = arith.constant 0 : index
    %c0_16 = arith.constant 0 : index
    %81 = vector.load %arg13[%c0_15, %c0_16] : memref<640x128xbf16, #tpu.memory_space<vmem>>, vector<640x128xbf16>
    %cst_17 = arith.constant dense<0.000000e+00> : vector<2x128xf32>
    %82 = tpu.matmul %78, %81, %cst_17 {dimension_numbers = #tpu.dot_dimension_numbers<[1], [0], [0], [1], [0, 0, 1, 1], [], []>} : vector<2x640xbf16>, vector<640x128xbf16>, vector<2x128xf32> -> vector<2x128xf32>
    %c0_18 = arith.constant 0 : index
    %c0_19 = arith.constant 0 : index
    %83 = vector.load %arg6[%c0_18, %c0_19] : memref<1x128xf32, #tpu.memory_space<vmem>>, vector<1x128xf32>
    %84 = vector.broadcast %83 : vector<1x128xf32> to vector<2x128xf32>
    %85 = arith.addf %82, %84 : vector<2x128xf32>
    %cst_20 = arith.constant 0.000000e+00 : f32
    %86 = vector.broadcast %cst_20 : f32 to vector<2x128xf32>
    %87 = arith.maximumf %85, %86 : vector<2x128xf32>
    %88 = arith.truncf %87 : vector<2x128xf32> to vector<2x128xbf16>
    %c0_21 = arith.constant 0 : index
    %c0_22 = arith.constant 0 : index
    %89 = vector.load %arg7[%c0_21, %c0_22] : memref<128x128xbf16, #tpu.memory_space<vmem>>, vector<128x128xbf16>
    %cst_23 = arith.constant dense<0.000000e+00> : vector<2x128xf32>
    %90 = tpu.matmul %88, %89, %cst_23 {dimension_numbers = #tpu.dot_dimension_numbers<[1], [0], [0], [1], [0, 0, 1, 1], [], []>} : vector<2x128xbf16>, vector<128x128xbf16>, vector<2x128xf32> -> vector<2x128xf32>
    %c0_24 = arith.constant 0 : index
    %c0_25 = arith.constant 0 : index
    %91 = vector.load %arg8[%c0_24, %c0_25] : memref<1x128xf32, #tpu.memory_space<vmem>>, vector<1x128xf32>
    %92 = vector.broadcast %91 : vector<1x128xf32> to vector<2x128xf32>
    %93 = arith.addf %90, %92 : vector<2x128xf32>
    %cst_26 = arith.constant 0.000000e+00 : f32
    %94 = vector.broadcast %cst_26 : f32 to vector<2x128xf32>
    %95 = arith.maximumf %93, %94 : vector<2x128xf32>
    %96 = arith.truncf %95 : vector<2x128xf32> to vector<2x128xbf16>
    %c0_27 = arith.constant 0 : index
    %c0_28 = arith.constant 0 : index
    %97 = vector.load %arg9[%c0_27, %c0_28] : memref<128x128xbf16, #tpu.memory_space<vmem>>, vector<128x128xbf16>
    %cst_29 = arith.constant dense<0.000000e+00> : vector<2x128xf32>
    %98 = tpu.matmul %96, %97, %cst_29 {dimension_numbers = #tpu.dot_dimension_numbers<[1], [0], [0], [1], [0, 0, 1, 1], [], []>} : vector<2x128xbf16>, vector<128x128xbf16>, vector<2x128xf32> -> vector<2x128xf32>
    %c0_30 = arith.constant 0 : index
    %c0_31 = arith.constant 0 : index
    %99 = vector.load %arg10[%c0_30, %c0_31] : memref<1x128xf32, #tpu.memory_space<vmem>>, vector<1x128xf32>
    %100 = vector.broadcast %99 : vector<1x128xf32> to vector<2x128xf32>
    %101 = arith.addf %98, %100 : vector<2x128xf32>
    %c0_32 = arith.constant 0 : index
    %c0_33 = arith.constant 0 : index
    %102 = vector.load %arg11[%c0_32, %c0_33] : memref<2x128xf32, #tpu.memory_space<vmem>>, vector<2x128xf32>
    tpu.vector_store %arg11[%c0_32, %c0_33], %101 {strides = array<i32>} : memref<2x128xf32, #tpu.memory_space<vmem>>, vector<2x128xf32>,
    return
  }
}

</mosaic_0001>

<bundles_post_ra>
// kernel: net_forward.1
= control target key start
LH: loop header
LB: loop body
LE: loop exit
PB: predicated region body
PF: predicated region fallthrough
CT: control target
= control target key end

     0   :  { %16 = vsyncpa [#allocation6], 0  ;;  %s3193_s0 = inlined_call_operand.vmem [shape: bf16[64,160], index: 0, kind: input, shape index: {}]   ;;  %s3194_s1 = inlined_call_operand.vmem [shape: bf16[160,256], index: 1, kind: input, shape index: {}]   ;;  %s3195_s2 = inlined_call_operand.vmem [shape: f32[1,128], index: 2, kind: input, shape index: {}]   ;;  %s3196_s3 = inlined_call_operand.vmem [shape: bf16[640,256], index: 3, kind: input, shape index: {}]   ;;  %s3197_s4 = inlined_call_operand.vmem [shape: f32[1,128], index: 4, kind: input, shape index: {}]   ;;  %s3198_s5 = inlined_call_operand.vmem [shape: bf16[640,128], index: 5, kind: input, shape index: {}]   ;;  %s3199_s6 = inlined_call_operand.vmem [shape: f32[1,128], index: 6, kind: input, shape index: {}]   ;;  %s3200_s7 = inlined_call_operand.vmem [shape: bf16[128,128], index: 7, kind: input, shape index: {}]   ;;  %s3201_s8 = inlined_call_operand.vmem [shape: f32[1,128], index: 8, kind: input, shape index: {}]   ;;  %s3202_s9 = inlined_call_operand.vmem [shape: bf16[128,128], index: 9, kind: input, shape index: {}]   ;;  %s3203_s10 = inlined_call_operand.vmem [shape: f32[1,128], index: 10, kind: input, shape index: {}]   ;;  %s3204_s11 = inlined_call_operand.hbm [shape: f32[2,128], index: 11, kind: output, shape index: {}]  }
   0x1   :  { %v53_v0 = vld [vmem:[%s3196_s3] sm:$0xf]  ;;  %v55_v1 = vld [vmem:[%s3196_s3 + $0x8] sm:$0xf]  ;;  %v57_v2 = vld [vmem:[%s3196_s3 + $0x4] sm:$0xf] }
   0x2   :  { %54 = vst [vmem:[#allocation2] sm:$0xf] %v53_v0  ;;  %56 = vst [vmem:[#allocation2 + $0x4] sm:$0xf] %v55_v1  ;;  %v59_v3 = vld [vmem:[%s3196_s3 + $0xc] sm:$0xff]   ;;  %v67_v6 = vld [vmem:[%s3196_s3 + $0x1c] sm:$0xff]  }
   0x3   :  { %v63_v4 = vld [vmem:[%s3196_s3 + $0x18] sm:$0xf]  ;;  %58 = vst [vmem:[#allocation2 + $0x8] sm:$0xf] %v57_v2  ;;  %60 = vst [vmem:[#allocation2 + $0xc] sm:$0xff] %v59_v3   ;;  %v75_v9 = vld [vmem:[%s3196_s3 + $0x2c] sm:$0xff]  }
   0x4   :  { %64 = vst [vmem:[#allocation2 + $0x14] sm:$0xf] %v63_v4  ;;  %v65_v5 = vld [vmem:[%s3196_s3 + $0x14] sm:$0xf]  ;;  %v71_v7 = vld [vmem:[%s3196_s3 + $0x28] sm:$0xf] }
   0x5   :  { %66 = vst [vmem:[#allocation2 + $0x18] sm:$0xf] %v65_v5  ;;  %68 = vst [vmem:[#allocation2 + $0x1c] sm:$0xff] %v67_v6   ;;  %v73_v8 = vld [vmem:[%s3196_s3 + $0x24] sm:$0xf]  ;;  %v83_v12 = vld [vmem:[%s3196_s3 + $0x3c] sm:$0xff]  }
   0x6   :  { %72 = vst [vmem:[#allocation2 + $0x24] sm:$0xf] %v71_v7  ;;  %v79_v10 = vld [vmem:[%s3196_s3 + $0x38] sm:$0xf]  ;;  %74 = vst [vmem:[#allocation2 + $0x28] sm:$0xf] %v73_v8 }
   0x7   :  { %76 = vst [vmem:[#allocation2 + $0x2c] sm:$0xff] %v75_v9   ;;  %80 = vst [vmem:[#allocation2 + $0x34] sm:$0xf] %v79_v10  ;;  %v81_v11 = vld [vmem:[%s3196_s3 + $0x34] sm:$0xf]  ;;  %v91_v15 = vld [vmem:[%s3196_s3 + $0x4c] sm:$0xff]  }
   0x8   :  { %v87_v13 = vld [vmem:[%s3196_s3 + $0x48] sm:$0xf]  ;;  %82 = vst [vmem:[#allocation2 + $0x38] sm:$0xf] %v81_v11  ;;  %84 = vst [vmem:[#allocation2 + $0x3c] sm:$0xff] %v83_v12   ;;  %v99_v18 = vld [vmem:[%s3196_s3 + $0x5c] sm:$0xff]  }
   0x9   :  { %88 = vst [vmem:[#allocation2 + $0x44] sm:$0xf] %v87_v13  ;;  %v89_v14 = vld [vmem:[%s3196_s3 + $0x44] sm:$0xf]  ;;  %v95_v16 = vld [vmem:[%s3196_s3 + $0x58] sm:$0xf] }
   0xa   :  { %90 = vst [vmem:[#allocation2 + $0x48] sm:$0xf] %v89_v14  ;;  %92 = vst [vmem:[#allocation2 + $0x4c] sm:$0xff] %v91_v15   ;;  %v97_v17 = vld [vmem:[%s3196_s3 + $0x54] sm:$0xf]  ;;  %v107_v21 = vld [vmem:[%s3196_s3 + $0x6c] sm:$0xff]  }
   0xb   :  { %96 = vst [vmem:[#allocation2 + $0x54] sm:$0xf] %v95_v16  ;;  %v103_v19 = vld [vmem:[%s3196_s3 + $0x68] sm:$0xf]  ;;  %98 = vst [vmem:[#allocation2 + $0x58] sm:$0xf] %v97_v17 }
   0xc   :  { %100 = vst [vmem:[#allocation2 + $0x5c] sm:$0xff] %v99_v18   ;;  %104 = vst [vmem:[#allocation2 + $0x64] sm:$0xf] %v103_v19  ;;  %v105_v20 = vld [vmem:[%s3196_s3 + $0x64] sm:$0xf]  ;;  %v115_v24 = vld [vmem:[%s3196_s3 + $0x7c] sm:$0xff]  }
   0xd   :  { %v111_v22 = vld [vmem:[%s3196_s3 + $0x78] sm:$0xf]  ;;  %106 = vst [vmem:[#allocation2 + $0x68] sm:$0xf] %v105_v20  ;;  %108 = vst [vmem:[#allocation2 + $0x6c] sm:$0xff] %v107_v21   ;;  %v123_v27 = vld [vmem:[%s3196_s3 + $0x8c] sm:$0xff]  }
   0xe   :  { %112 = vst [vmem:[#allocation2 + $0x74] sm:$0xf] %v111_v22  ;;  %v113_v23 = vld [vmem:[%s3196_s3 + $0x74] sm:$0xf]  ;;  %v119_v25 = vld [vmem:[%s3196_s3 + $0x88] sm:$0xf] }
   0xf   :  { %114 = vst [vmem:[#allocation2 + $0x78] sm:$0xf] %v113_v23  ;;  %116 = vst [vmem:[#allocation2 + $0x7c] sm:$0xff] %v115_v24   ;;  %v121_v26 = vld [vmem:[%s3196_s3 + $0x84] sm:$0xf]  ;;  %v131_v30 = vld [vmem:[%s3196_s3 + $0x9c] sm:$0xff]  }
  0x10   :  { %120 = vst [vmem:[#allocation2 + $0x84] sm:$0xf] %v119_v25  ;;  %v127_v28 = vld [vmem:[%s3196_s3 + $0x98] sm:$0xf]  ;;  %122 = vst [vmem:[#allocation2 + $0x88] sm:$0xf] %v121_v26 }
  0x11   :  { %124 = vst [vmem:[#allocation2 + $0x8c] sm:$0xff] %v123_v27   ;;  %128 = vst [vmem:[#allocation2 + $0x94] sm:$0xf] %v127_v28  ;;  %v129_v29 = vld [vmem:[%s3196_s3 + $0x94] sm:$0xf]  ;;  %v139_v33 = vld [vmem:[%s3196_s3 + $0xac] sm:$0xff]  }
  0x12   :  { %v135_v31 = vld [vmem:[%s3196_s3 + $0xa8] sm:$0xf]  ;;  %130 = vst [vmem:[#allocation2 + $0x98] sm:$0xf] %v129_v29  ;;  %132 = vst [vmem:[#allocation2 + $0x9c] sm:$0xff] %v131_v30   ;;  %v147_v36 = vld [vmem:[%s3196_s3 + $0xbc] sm:$0xff]  }
  0x13   :  { %136 = vst [vmem:[#allocation2 + $0xa4] sm:$0xf] %v135_v31  ;;  %v137_v32 = vld [vmem:[%s3196_s3 + $0xa4] sm:$0xf]  ;;  %v143_v34 = vld [vmem:[%s3196_s3 + $0xb8] sm:$0xf] }
  0x14   :  { %138 = vst [vmem:[#allocation2 + $0xa8] sm:$0xf] %v137_v32  ;;  %140 = vst [vmem:[#allocation2 + $0xac] sm:$0xff] %v139_v33   ;;  %v145_v35 = vld [vmem:[%s3196_s3 + $0xb4] sm:$0xf]  ;;  %v155_v39 = vld [vmem:[%s3196_s3 + $0xcc] sm:$0xff]  }
  0x15   :  { %144 = vst [vmem:[#allocation2 + $0xb4] sm:$0xf] %v143_v34  ;;  %v151_v37 = vld [vmem:[%s3196_s3 + $0xc8] sm:$0xf]  ;;  %146 = vst [vmem:[#allocation2 + $0xb8] sm:$0xf] %v145_v35 }
  0x16   :  { %148 = vst [vmem:[#allocation2 + $0xbc] sm:$0xff] %v147_v36   ;;  %152 = vst [vmem:[#allocation2 + $0xc4] sm:$0xf] %v151_v37  ;;  %v153_v38 = vld [vmem:[%s3196_s3 + $0xc4] sm:$0xf]  ;;  %v163_v42 = vld [vmem:[%s3196_s3 + $0xdc] sm:$0xff]  }
  0x17   :  { %v159_v40 = vld [vmem:[%s3196_s3 + $0xd8] sm:$0xf]  ;;  %154 = vst [vmem:[#allocation2 + $0xc8] sm:$0xf] %v153_v38  ;;  %156 = vst [vmem:[#allocation2 + $0xcc] sm:$0xff] %v155_v39   ;;  %v171_v45 = vld [vmem:[%s3196_s3 + $0xec] sm:$0xff]  }
  0x18   :  { %160 = vst [vmem:[#allocation2 + $0xd4] sm:$0xf] %v159_v40  ;;  %v161_v41 = vld [vmem:[%s3196_s3 + $0xd4] sm:$0xf]  ;;  %v167_v43 = vld [vmem:[%s3196_s3 + $0xe8] sm:$0xf] }
  0x19   :  { %162 = vst [vmem:[#allocation2 + $0xd8] sm:$0xf] %v161_v41  ;;  %164 = vst [vmem:[#allocation2 + $0xdc] sm:$0xff] %v163_v42   ;;  %v169_v44 = vld [vmem:[%s3196_s3 + $0xe4] sm:$0xf]  ;;  %v179_v48 = vld [vmem:[%s3196_s3 + $0xfc] sm:$0xff]  }
  0x1a   :  { %168 = vst [vmem:[#allocation2 + $0xe4] sm:$0xf] %v167_v43  ;;  %v175_v46 = vld [vmem:[%s3196_s3 + $0xf8] sm:$0xf]  ;;  %170 = vst [vmem:[#allocation2 + $0xe8] sm:$0xf] %v169_v44 }
  0x1b   :  { %172 = vst [vmem:[#allocation2 + $0xec] sm:$0xff] %v171_v45   ;;  %176 = vst [vmem:[#allocation2 + $0xf4] sm:$0xf] %v175_v46  ;;  %v177_v47 = vld [vmem:[%s3196_s3 + $0xf4] sm:$0xf]  ;;  %v187_v51 = vld [vmem:[%s3196_s3 + $0x10c] sm:$0xff]  }
  0x1c   :  { %v183_v49 = vld [vmem:[%s3196_s3 + $0x108] sm:$0xf]  ;;  %178 = vst [vmem:[#allocation2 + $0xf8] sm:$0xf] %v177_v47  ;;  %180 = vst [vmem:[#allocation2 + $0xfc] sm:$0xff] %v179_v48   ;;  %v195_v54 = vld [vmem:[%s3196_s3 + $0x11c] sm:$0xff]  }
  0x1d   :  { %184 = vst [vmem:[#allocation2 + $0x104] sm:$0xf] %v183_v49  ;;  %v185_v50 = vld [vmem:[%s3196_s3 + $0x104] sm:$0xf]  ;;  %v191_v52 = vld [vmem:[%s3196_s3 + $0x118] sm:$0xf] }
  0x1e   :  { %186 = vst [vmem:[#allocation2 + $0x108] sm:$0xf] %v185_v50  ;;  %188 = vst [vmem:[#allocation2 + $0x10c] sm:$0xff] %v187_v51   ;;  %v193_v53 = vld [vmem:[%s3196_s3 + $0x114] sm:$0xf]  ;;  %v203_v57 = vld [vmem:[%s3196_s3 + $0x12c] sm:$0xff]  }
  0x1f   :  { %192 = vst [vmem:[#allocation2 + $0x114] sm:$0xf] %v191_v52  ;;  %v199_v55 = vld [vmem:[%s3196_s3 + $0x128] sm:$0xf]  ;;  %194 = vst [vmem:[#allocation2 + $0x118] sm:$0xf] %v193_v53 }
  0x20   :  { %196 = vst [vmem:[#allocation2 + $0x11c] sm:$0xff] %v195_v54   ;;  %200 = vst [vmem:[#allocation2 + $0x124] sm:$0xf] %v199_v55  ;;  %v201_v56 = vld [vmem:[%s3196_s3 + $0x124] sm:$0xf]  ;;  %v211_v60 = vld [vmem:[%s3196_s3 + $0x13c] sm:$0xff]  }
  0x21   :  { %v207_v58 = vld [vmem:[%s3196_s3 + $0x138] sm:$0xf]  ;;  %202 = vst [vmem:[#allocation2 + $0x128] sm:$0xf] %v201_v56  ;;  %204 = vst [vmem:[#allocation2 + $0x12c] sm:$0xff] %v203_v57   ;;  %v219_v63 = vld [vmem:[%s3196_s3 + $0x14c] sm:$0xff]  }
  0x22   :  { %208 = vst [vmem:[#allocation2 + $0x134] sm:$0xf] %v207_v58  ;;  %v209_v59 = vld [vmem:[%s3196_s3 + $0x134] sm:$0xf]  ;;  %v215_v61 = vld [vmem:[%s3196_s3 + $0x148] sm:$0xf] }
  0x23   :  { %210 = vst [vmem:[#allocation2 + $0x138] sm:$0xf] %v209_v59  ;;  %212 = vst [vmem:[#allocation2 + $0x13c] sm:$0xff] %v211_v60   ;;  %v217_v62 = vld [vmem:[%s3196_s3 + $0x144] sm:$0xf]  ;;  %v227_v2 = vld [vmem:[%s3196_s3 + $0x15c] sm:$0xff]  }
  0x24   :  { %216 = vst [vmem:[#allocation2 + $0x144] sm:$0xf] %v215_v61  ;;  %v223_v0 = vld [vmem:[%s3196_s3 + $0x158] sm:$0xf]  ;;  %218 = vst [vmem:[#allocation2 + $0x148] sm:$0xf] %v217_v62 }
  0x25   :  { %220 = vst [vmem:[#allocation2 + $0x14c] sm:$0xff] %v219_v63   ;;  %224 = vst [vmem:[#allocation2 + $0x154] sm:$0xf] %v223_v0  ;;  %v225_v1 = vld [vmem:[%s3196_s3 + $0x154] sm:$0xf]  ;;  %v235_v5 = vld [vmem:[%s3196_s3 + $0x16c] sm:$0xff]  }
  0x26   :  { %v231_v3 = vld [vmem:[%s3196_s3 + $0x168] sm:$0xf]  ;;  %226 = vst [vmem:[#allocation2 + $0x158] sm:$0xf] %v225_v1  ;;  %228 = vst [vmem:[#allocation2 + $0x15c] sm:$0xff] %v227_v2   ;;  %v243_v8 = vld [vmem:[%s3196_s3 + $0x17c] sm:$0xff]  }
  0x27   :  { %232 = vst [vmem:[#allocation2 + $0x164] sm:$0xf] %v231_v3  ;;  %v233_v4 = vld [vmem:[%s3196_s3 + $0x164] sm:$0xf]  ;;  %v239_v6 = vld [vmem:[%s3196_s3 + $0x178] sm:$0xf] }
  0x28   :  { %234 = vst [vmem:[#allocation2 + $0x168] sm:$0xf] %v233_v4  ;;  %236 = vst [vmem:[#allocation2 + $0x16c] sm:$0xff] %v235_v5   ;;  %v241_v7 = vld [vmem:[%s3196_s3 + $0x174] sm:$0xf]  ;;  %v251_v11 = vld [vmem:[%s3196_s3 + $0x18c] sm:$0xff]  }
  0x29   :  { %240 = vst [vmem:[#allocation2 + $0x174] sm:$0xf] %v239_v6  ;;  %v247_v9 = vld [vmem:[%s3196_s3 + $0x188] sm:$0xf]  ;;  %242 = vst [vmem:[#allocation2 + $0x178] sm:$0xf] %v241_v7 }
  0x2a   :  { %244 = vst [vmem:[#allocation2 + $0x17c] sm:$0xff] %v243_v8   ;;  %248 = vst [vmem:[#allocation2 + $0x184] sm:$0xf] %v247_v9  ;;  %v249_v10 = vld [vmem:[%s3196_s3 + $0x184] sm:$0xf]  ;;  %v259_v14 = vld [vmem:[%s3196_s3 + $0x19c] sm:$0xff]  }
  0x2b   :  { %v255_v12 = vld [vmem:[%s3196_s3 + $0x198] sm:$0xf]  ;;  %250 = vst [vmem:[#allocation2 + $0x188] sm:$0xf] %v249_v10  ;;  %252 = vst [vmem:[#allocation2 + $0x18c] sm:$0xff] %v251_v11   ;;  %v267_v17 = vld [vmem:[%s3196_s3 + $0x1ac] sm:$0xff]  }
  0x2c   :  { %256 = vst [vmem:[#allocation2 + $0x194] sm:$0xf] %v255_v12  ;;  %v257_v13 = vld [vmem:[%s3196_s3 + $0x194] sm:$0xf]  ;;  %v263_v15 = vld [vmem:[%s3196_s3 + $0x1a8] sm:$0xf] }
  0x2d   :  { %258 = vst [vmem:[#allocation2 + $0x198] sm:$0xf] %v257_v13  ;;  %260 = vst [vmem:[#allocation2 + $0x19c] sm:$0xff] %v259_v14   ;;  %v265_v16 = vld [vmem:[%s3196_s3 + $0x1a4] sm:$0xf]  ;;  %v275_v20 = vld [vmem:[%s3196_s3 + $0x1bc] sm:$0xff]  }
  0x2e   :  { %264 = vst [vmem:[#allocation2 + $0x1a4] sm:$0xf] %v263_v15  ;;  %v271_v18 = vld [vmem:[%s3196_s3 + $0x1b8] sm:$0xf]  ;;  %266 = vst [vmem:[#allocation2 + $0x1a8] sm:$0xf] %v265_v16 }
  0x2f   :  { %268 = vst [vmem:[#allocation2 + $0x1ac] sm:$0xff] %v267_v17   ;;  %272 = vst [vmem:[#allocation2 + $0x1b4] sm:$0xf] %v271_v18  ;;  %v273_v19 = vld [vmem:[%s3196_s3 + $0x1b4] sm:$0xf]  ;;  %v283_v23 = vld [vmem:[%s3196_s3 + $0x1cc] sm:$0xff]  }
  0x30   :  { %v279_v21 = vld [vmem:[%s3196_s3 + $0x1c8] sm:$0xf]  ;;  %274 = vst [vmem:[#allocation2 + $0x1b8] sm:$0xf] %v273_v19  ;;  %276 = vst [vmem:[#allocation2 + $0x1bc] sm:$0xff] %v275_v20   ;;  %v291_v26 = vld [vmem:[%s3196_s3 + $0x1dc] sm:$0xff]  }
  0x31   :  { %280 = vst [vmem:[#allocation2 + $0x1c4] sm:$0xf] %v279_v21  ;;  %v281_v22 = vld [vmem:[%s3196_s3 + $0x1c4] sm:$0xf]  ;;  %v287_v24 = vld [vmem:[%s3196_s3 + $0x1d8] sm:$0xf] }
  0x32   :  { %282 = vst [vmem:[#allocation2 + $0x1c8] sm:$0xf] %v281_v22  ;;  %284 = vst [vmem:[#allocation2 + $0x1cc] sm:$0xff] %v283_v23   ;;  %v289_v25 = vld [vmem:[%s3196_s3 + $0x1d4] sm:$0xf]  ;;  %v299_v29 = vld [vmem:[%s3196_s3 + $0x1ec] sm:$0xff]  }
  0x33   :  { %288 = vst [vmem:[#allocation2 + $0x1d4] sm:$0xf] %v287_v24  ;;  %v295_v27 = vld [vmem:[%s3196_s3 + $0x1e8] sm:$0xf]  ;;  %290 = vst [vmem:[#allocation2 + $0x1d8] sm:$0xf] %v289_v25 }
  0x34   :  { %292 = vst [vmem:[#allocation2 + $0x1dc] sm:$0xff] %v291_v26   ;;  %296 = vst [vmem:[#allocation2 + $0x1e4] sm:$0xf] %v295_v27  ;;  %v297_v28 = vld [vmem:[%s3196_s3 + $0x1e4] sm:$0xf]  ;;  %v307_v32 = vld [vmem:[%s3196_s3 + $0x1fc] sm:$0xff]  }
  0x35   :  { %v303_v30 = vld [vmem:[%s3196_s3 + $0x1f8] sm:$0xf]  ;;  %298 = vst [vmem:[#allocation2 + $0x1e8] sm:$0xf] %v297_v28  ;;  %300 = vst [vmem:[#allocation2 + $0x1ec] sm:$0xff] %v299_v29   ;;  %v315_v35 = vld [vmem:[%s3196_s3 + $0x20c] sm:$0xff]  }
  0x36   :  { %304 = vst [vmem:[#allocation2 + $0x1f4] sm:$0xf] %v303_v30  ;;  %v305_v31 = vld [vmem:[%s3196_s3 + $0x1f4] sm:$0xf]  ;;  %v311_v33 = vld [vmem:[%s3196_s3 + $0x208] sm:$0xf] }
  0x37   :  { %306 = vst [vmem:[#allocation2 + $0x1f8] sm:$0xf] %v305_v31  ;;  %308 = vst [vmem:[#allocation2 + $0x1fc] sm:$0xff] %v307_v32   ;;  %v313_v34 = vld [vmem:[%s3196_s3 + $0x204] sm:$0xf]  ;;  %v323_v38 = vld [vmem:[%s3196_s3 + $0x21c] sm:$0xff]  }
  0x38   :  { %312 = vst [vmem:[#allocation2 + $0x204] sm:$0xf] %v311_v33  ;;  %v319_v36 = vld [vmem:[%s3196_s3 + $0x218] sm:$0xf]  ;;  %314 = vst [vmem:[#allocation2 + $0x208] sm:$0xf] %v313_v34 }
  0x39   :  { %316 = vst [vmem:[#allocation2 + $0x20c] sm:$0xff] %v315_v35   ;;  %320 = vst [vmem:[#allocation2 + $0x214] sm:$0xf] %v319_v36  ;;  %v321_v37 = vld [vmem:[%s3196_s3 + $0x214] sm:$0xf]  ;;  %v331_v41 = vld [vmem:[%s3196_s3 + $0x22c] sm:$0xff]  }
  0x3a   :  { %v327_v39 = vld [vmem:[%s3196_s3 + $0x228] sm:$0xf]  ;;  %322 = vst [vmem:[#allocation2 + $0x218] sm:$0xf] %v321_v37  ;;  %324 = vst [vmem:[#allocation2 + $0x21c] sm:$0xff] %v323_v38   ;;  %v339_v44 = vld [vmem:[%s3196_s3 + $0x23c] sm:$0xff]  }
  0x3b   :  { %328 = vst [vmem:[#allocation2 + $0x224] sm:$0xf] %v327_v39  ;;  %v329_v40 = vld [vmem:[%s3196_s3 + $0x224] sm:$0xf]  ;;  %v335_v42 = vld [vmem:[%s3196_s3 + $0x238] sm:$0xf] }
  0x3c   :  { %330 = vst [vmem:[#allocation2 + $0x228] sm:$0xf] %v329_v40  ;;  %332 = vst [vmem:[#allocation2 + $0x22c] sm:$0xff] %v331_v41   ;;  %v337_v43 = vld [vmem:[%s3196_s3 + $0x234] sm:$0xf]  ;;  %v347_v47 = vld [vmem:[%s3196_s3 + $0x24c] sm:$0xff]  }
  0x3d   :  { %336 = vst [vmem:[#allocation2 + $0x234] sm:$0xf] %v335_v42  ;;  %v343_v45 = vld [vmem:[%s3196_s3 + $0x248] sm:$0xf]  ;;  %338 = vst [vmem:[#allocation2 + $0x238] sm:$0xf] %v337_v43 }
  0x3e   :  { %340 = vst [vmem:[#allocation2 + $0x23c] sm:$0xff] %v339_v44   ;;  %344 = vst [vmem:[#allocation2 + $0x244] sm:$0xf] %v343_v45  ;;  %v345_v46 = vld [vmem:[%s3196_s3 + $0x244] sm:$0xf]  ;;  %v355_v50 = vld [vmem:[%s3196_s3 + $0x25c] sm:$0xff]  }
  0x3f   :  { %v351_v48 = vld [vmem:[%s3196_s3 + $0x258] sm:$0xf]  ;;  %346 = vst [vmem:[#allocation2 + $0x248] sm:$0xf] %v345_v46  ;;  %348 = vst [vmem:[#allocation2 + $0x24c] sm:$0xff] %v347_v47   ;;  %v363_v53 = vld [vmem:[%s3196_s3 + $0x26c] sm:$0xff]  }
  0x40   :  { %352 = vst [vmem:[#allocation2 + $0x254] sm:$0xf] %v351_v48  ;;  %v353_v49 = vld [vmem:[%s3196_s3 + $0x254] sm:$0xf]  ;;  %v359_v51 = vld [vmem:[%s3196_s3 + $0x268] sm:$0xf] }
  0x41   :  { %354 = vst [vmem:[#allocation2 + $0x258] sm:$0xf] %v353_v49  ;;  %356 = vst [vmem:[#allocation2 + $0x25c] sm:$0xff] %v355_v50   ;;  %v361_v52 = vld [vmem:[%s3196_s3 + $0x264] sm:$0xf] }
  0x42   :  { %360 = vst [vmem:[#allocation2 + $0x264] sm:$0xf] %v359_v51  ;;  %v367_v54 = vld [vmem:[%s3196_s3 + $0x278] sm:$0xf]  ;;  %362 = vst [vmem:[#allocation2 + $0x268] sm:$0xf] %v361_v52 }
  0x43   :  { %364 = vst [vmem:[#allocation2 + $0x26c] sm:$0xff] %v363_v53   ;;  %368 = vst [vmem:[#allocation2 + $0x274] sm:$0xf] %v367_v54  ;;  %v369_v55 = vld [vmem:[%s3196_s3 + $0x274] sm:$0xf] }
  0x44   :  { %v371_v56 = vld [vmem:[%s3196_s3 + $0x27c] sm:$0xf]  ;;  %370 = vst [vmem:[#allocation2 + $0x278] sm:$0xf] %v369_v55 }
  0x45   :  { %372 = vst [vmem:[#allocation2 + $0x27c] sm:$0xf] %v371_v56 }
  0x46   :  { %723 = vsyncadd [#allocation4], 10240  ;;  %v2669_v57 = vld [vmem:[%s3198_s5] sm:$0xff]  ;;  %v2674_v58 = vld [vmem:[%s3198_s5 + $0x8] sm:$0xff] }
  0x47   :  { %v2679_v59 = vld [vmem:[%s3198_s5 + $0x10] sm:$0xff]  ;;  %v2684_v60 = vld [vmem:[%s3198_s5 + $0x18] sm:$0xff]  ;;  %v2689_v61 = vld [vmem:[%s3198_s5 + $0x20] sm:$0xff] }
  0x48   :  { %v2694_v62 = vld [vmem:[%s3198_s5 + $0x28] sm:$0xff]  ;;  %v2699_v63 = vld [vmem:[%s3198_s5 + $0x30] sm:$0xff]  ;;  %v2704_v0 = vld [vmem:[%s3198_s5 + $0x38] sm:$0xff] }
  0x49   :  { %v2709_v1 = vld [vmem:[%s3198_s5 + $0x40] sm:$0xff]  ;;  %v2714_v2 = vld [vmem:[%s3198_s5 + $0x48] sm:$0xff]  ;;  %v2719_v3 = vld [vmem:[%s3198_s5 + $0x50] sm:$0xff] }
  0x4a   :  { %v2724_v4 = vld [vmem:[%s3198_s5 + $0x58] sm:$0xff]  ;;  %v2729_v5 = vld [vmem:[%s3198_s5 + $0x60] sm:$0xff]  ;;  %v2734_v6 = vld [vmem:[%s3198_s5 + $0x68] sm:$0xff] }
  0x4b   :  { %v2739_v7 = vld [vmem:[%s3198_s5 + $0x70] sm:$0xff]  ;;  %v2744_v8 = vld [vmem:[%s3198_s5 + $0x78] sm:$0xff]  ;;  %v2749_v9 = vld [vmem:[%s3198_s5 + $0x80] sm:$0xff] }
  0x4c   :  { %v2754_v10 = vld [vmem:[%s3198_s5 + $0x88] sm:$0xff]  ;;  %v2759_v11 = vld [vmem:[%s3198_s5 + $0x90] sm:$0xff]  ;;  %v2764_v12 = vld [vmem:[%s3198_s5 + $0x98] sm:$0xff] }
  0x4d   :  { %v2769_v13 = vld [vmem:[%s3198_s5 + $0xa0] sm:$0xff]  ;;  %v2774_v14 = vld [vmem:[%s3198_s5 + $0xa8] sm:$0xff]  ;;  %v2779_v15 = vld [vmem:[%s3198_s5 + $0xb0] sm:$0xff] }
  0x4e   :  { %v2784_v16 = vld [vmem:[%s3198_s5 + $0xb8] sm:$0xff]  ;;  %v2789_v17 = vld [vmem:[%s3198_s5 + $0xc0] sm:$0xff]  ;;  %v2794_v18 = vld [vmem:[%s3198_s5 + $0xc8] sm:$0xff] }
  0x4f   :  { %3205 = vst [vmem:[#allocation12_spill] sm:$0xff] %v2784_v16  ;;  %v2799_v19 = vld [vmem:[%s3198_s5 + $0xd0] sm:$0xff]  ;;  %v2804_v20 = vld [vmem:[%s3198_s5 + $0xd8] sm:$0xff]  ;;  %v2809_v21 = vld [vmem:[%s3198_s5 + $0xe0] sm:$0xff] }
  0x50   :  { %v2814_v22 = vld [vmem:[%s3198_s5 + $0xe8] sm:$0xff]  ;;  %v2819_v23 = vld [vmem:[%s3198_s5 + $0xf0] sm:$0xff]  ;;  %v2824_v24 = vld [vmem:[%s3198_s5 + $0xf8] sm:$0xff] }
  0x51   :  { %3206 = vst [vmem:[#allocation13_spill] sm:$0xff] %v2824_v24  ;;  %v2829_v25 = vld [vmem:[%s3198_s5 + $0x100] sm:$0xff]  ;;  %v2834_v26 = vld [vmem:[%s3198_s5 + $0x108] sm:$0xff]  ;;  %v2839_v27 = vld [vmem:[%s3198_s5 + $0x110] sm:$0xff] }
  0x52   :  { %3207 = vst [vmem:[#allocation14_spill] sm:$0xff] %v2829_v25  ;;  %3208 = vst [vmem:[#allocation15_spill] sm:$0xff] %v2834_v26  ;;  %v2844_v28 = vld [vmem:[%s3198_s5 + $0x118] sm:$0xff]  ;;  %v2849_v29 = vld [vmem:[%s3198_s5 + $0x120] sm:$0xff] }
  0x53   :  { %3209 = vst [vmem:[#allocation16_spill] sm:$0xff] %v2839_v27  ;;  %3210 = vst [vmem:[#allocation17_spill] sm:$0xff] %v2844_v28  ;;  %v2854_v30 = vld [vmem:[%s3198_s5 + $0x128] sm:$0xff]  ;;  %v2859_v31 = vld [vmem:[%s3198_s5 + $0x130] sm:$0xff] }
  0x54   :  { %3211 = vst [vmem:[#allocation18_spill] sm:$0xff] %v2849_v29  ;;  %3212 = vst [vmem:[#allocation19_spill] sm:$0xff] %v2854_v30  ;;  %v2864_v32 = vld [vmem:[%s3198_s5 + $0x138] sm:$0xff] }
  0x55   :  { %3213 = vst [vmem:[#allocation20_spill] sm:$0xff] %v2859_v31  ;;  %3214 = vst [vmem:[#allocation21_spill] sm:$0xff] %v2864_v32 }
  0x56   :  { %844 = vsyncadd [#allocation4 + $0x1], 5120  ;;  %v2153_v33 = vld [vmem:[%s3194_s1 + $0x4] ss:$8 sps:$4 sm:$0xff]   ;;  %v2155_v34 = vld [vmem:[%s3194_s1] ss:$8 sps:$4 sm:$0xff]  }
  0x57   :  { %v2156_v35 = vld [vmem:[%s3194_s1 + $0x14] ss:$8 sps:$4 sm:$0xff]   ;;  %1022 = vmatprep.subr.bf16.mxu0 %v2153_v33  ;;  %v2158_v36 = vld [vmem:[%s3194_s1 + $0x10] ss:$8 sps:$4 sm:$0xff]   ;;  %v2159_v37 = vld [vmem:[%s3194_s1 + $0x24] ss:$8 sps:$4 sm:$0xff]  }
  0x58   :  { %1023 = vmatpush1.bf16.msra.mxu0 %v2155_v34  ;;  %v2161_v38 = vld [vmem:[%s3194_s1 + $0x20] ss:$8 sps:$4 sm:$0xff]   ;;  %v2162_v39 = vld [vmem:[%s3194_s1 + $0x34] ss:$8 sps:$4 sm:$0xff]   ;;  %v2164_v40 = vld [vmem:[%s3194_s1 + $0x30] ss:$8 sps:$4 sm:$0xff]  }
  0x59   :  { %1024 = vmatprep.subr.bf16.mxu0 %v2156_v35  ;;  %v2165_v41 = vld [vmem:[%s3194_s1 + $0x44] ss:$8 sps:$4 sm:$0xff]   ;;  %vm1009_vm0 = vcmask 261120   ;;  %v2167_v43 = vld [vmem:[%s3194_s1 + $0x40] ss:$8 sps:$4 sm:$0xff]   ;;  %vm1125_vm1 = vcmask 1044480  }
  0x5a   :  { %v2185_v42 = vld [vmem:[%s3193_s0 + $0x4] ss:$8 sps:$4 sm:$0xff]   ;;  %v2168_v44 = vld [vmem:[%s3194_s1 + $0x54] ss:$8 sps:$4 sm:$0xff]   ;;  %v2170_v45 = vld [vmem:[%s3194_s1 + $0x50] ss:$8 sps:$4 sm:$0xff]  }
  0x5b   :  { %1973 = vmatprep.mubr.msk.bf16.mxu0 %vm1009_vm0, %v2185_v42  ;;  %v2171_v46 = vld [vmem:[%s3194_s1 + $0x64] ss:$8 sps:$4 sm:$0xff]   ;;  %v2173_v47 = vld [vmem:[%s3194_s1 + $0x60] ss:$8 sps:$4 sm:$0xff]   ;;  %v2174_v48 = vld [vmem:[%s3194_s1 + $0x74] ss:$8 sps:$4 sm:$0xff]  }
  0x5c   :  { %1025 = vmatpush1.bf16.msra.mxu0 %v2158_v36  ;;  %v2176_v49 = vld [vmem:[%s3194_s1 + $0x70] ss:$8 sps:$4 sm:$0xff]   ;;  %v2177_v50 = vld [vmem:[%s3194_s1 + $0x84] ss:$8 sps:$4 sm:$0xff]   ;;  %v2179_v51 = vld [vmem:[%s3194_s1 + $0x80] ss:$8 sps:$4 sm:$0xff]  }
  0x5d   :  { %1026 = vmatprep.subr.bf16.mxu0 %v2159_v37  ;;  %v2180_v52 = vld [vmem:[%s3194_s1 + $0x94] ss:$8 sps:$4 sm:$0xff]   ;;  %v2182_v53 = vld [vmem:[%s3194_s1 + $0x90] ss:$8 sps:$4 sm:$0xff]   ;;  %v2183_v54 = vld [vmem:[%s3193_s0] ss:$8 sps:$4 sm:$0xff]  }
  0x5e   :  { %v2186_v55 = vld [vmem:[%s3193_s0 + $0x14] ss:$8 sps:$4 sm:$0xff]   ;;  %v2188_v56 = vld [vmem:[%s3193_s0 + $0x10] ss:$8 sps:$4 sm:$0xff]   ;;  %v2189_v33 = vld [vmem:[%s3193_s0 + $0x24] ss:$8 sps:$4 sm:$0xff]  }
  0x5f   :  { %v2191_v34 = vld [vmem:[%s3193_s0 + $0x20] ss:$8 sps:$4 sm:$0xff]   ;;  %v2192_v35 = vld [vmem:[%s3193_s0 + $0x34] ss:$8 sps:$4 sm:$0xff]   ;;  %v2194_v36 = vld [vmem:[%s3193_s0 + $0x30] ss:$8 sps:$4 sm:$0xff]  }
  0x60   :  { %1027 = vmatpush1.bf16.msra.mxu0 %v2161_v38  ;;  %vm1158_vm2 = vcmask 1041408  }
  0x61   :  { %1028 = vmatprep.subr.bf16.mxu0 %v2162_v39 }
  0x64   :  { %1029 = vmatpush1.bf16.msra.mxu0 %v2164_v40 }
  0x65   :  { %1030 = vmatprep.subr.bf16.mxu0 %v2165_v41 }
  0x68   :  { %1031 = vmatpush1.bf16.msra.mxu0 %v2167_v43 }
  0x69   :  { %1032 = vmatprep.subr.bf16.mxu0 %v2168_v44 }
  0x6c   :  { %1033 = vmatpush1.bf16.msra.mxu0 %v2170_v45 }
  0x6d   :  { %1034 = vmatprep.subr.bf16.mxu0 %v2171_v46  ;;  %v1977_v46 = vld [vmem:[%s3195_s2] ss:$0 sm:$0xff] }
  0x70   :  { %1035 = vmatpush1.bf16.msra.mxu0 %v2173_v47 }
  0x71   :  { %1036 = vmatprep.subr.bf16.mxu0 %v2174_v48 }
  0x74   :  { %1037 = vmatpush1.bf16.msra.mxu0 %v2176_v49 }
  0x75   :  { %1038 = vmatprep.subr.bf16.mxu0 %v2177_v50 }
  0x78   :  { %1039 = vmatpush1.bf16.msra.mxu0 %v2179_v51 }
  0x79   :  { %1040 = vmatprep.subr.bf16.mxu0 %v2180_v52 }
  0x7c   :  { %1041 = vmatpush1.bf16.msra.mxu0 %v2182_v53 }
  0x7f   :  { %1055 = vmatmul.mubr.bf16.vlgmr.msra.gmra.mrb[0].mxu0 %v2183_v54 }
  0x80   :  { %1974 = vmatprep.mubr.msk.bf16.mxu0 %vm1009_vm0, %v2186_v55 }
  0x87   :  { %1065 = vmatmul.mubr.bf16.gmra.mrb[4].mxu0 %v2188_v56 }
  0x88   :  { %1975 = vmatprep.mubr.msk.bf16.mxu0 %vm1009_vm0, %v2189_v33 }
  0x8f   :  { %1075 = vmatmul.mubr.bf16.gmra.mrb[8].mxu0 %v2191_v34 }
  0x90   :  { %1976 = vmatprep.mubr.msk.bf16.mxu0 %vm1009_vm0, %v2192_v35 }
  0x97   :  { %1085 = vmatmul.mubr.bf16.gmra.mrb[12].mxu0 %v2194_v36 }
 0x152   :  { %v1056_v37 = vpop.f32.mrb[0].mxu0 }
 0x153   :  { %v1058_v38 = vpop.f32.mrb[1].mxu0 }
 0x154   :  { %v1060_v39 = vpop.f32.mrb[2].mxu0 }
 0x155   :  { %v1062_v40 = vpop.f32.mrb[3].mxu0 }
 0x15a   :  { %v1066_v41 = vpop.f32.mrb[4].mxu0 }
 0x15b   :  { %v1096_v42 = vmax.f32 %v1056_v37, %v1066_v41  ;;  %v1068_v43 = vpop.f32.mrb[5].mxu0 }
 0x15c   :  { %v1097_v44 = vmax.f32 %v1058_v38, %v1068_v43  ;;  %v1070_v45 = vpop.f32.mrb[6].mxu0 }
 0x15d   :  { %v1098_v47 = vmax.f32 %v1060_v39, %v1070_v45  ;;  %v1072_v48 = vpop.f32.mrb[7].mxu0 }
 0x15e   :  { %v1104_v49 = vmax.f32 %v1096_v42, %v1097_v44  ;;  %v1099_v50 = vmax.f32 %v1062_v40, %v1072_v48 }
 0x160   :  { %v1112_v51 = vadd.f32 %v1977_v46, %v1104_v49  ;;  %v1105_v52 = vmax.f32 %v1098_v47, %v1099_v50 }
 0x162   :  { %v1114_v53 = vmax.f32 %v1112_v51, 0.0  ;;  %v1113_v54 = vadd.f32 %v1977_v46, %v1105_v52  ;;  %v1076_v55 = vpop.f32.mrb[8].mxu0 }
 0x163   :  { %v1078_v56 = vpop.f32.mrb[9].mxu0 }
 0x164   :  { %v1115_v33 = vmax.f32 %v1113_v54, 0.0  ;;  %v1080_v34 = vpop.f32.mrb[10].mxu0  ;;  %v1132_v35 = vrot.slane %v1114_v53, 1  ;;  %v1143_v37 = vrot.slane %v1114_v53, 2 }
 0x165   :  { %v1082_v36 = vpop.f32.mrb[11].mxu0 }
 0x166   :  { %v1123_v38 = vrot.slane %v1115_v33, 3  ;;  %v1134_v41 = vrot.slane %v1115_v33, 4  ;;  %v1145_v43 = vrot.slane %v1115_v33, 5 }
 0x168   :  { %v2958_v39 = vsel %vm1125_vm1, %v1114_v53, %v1123_v38  ;;  %v2961_v40 = vsel %vm1125_vm1, %v1132_v35, %v1134_v41  ;;  %v2964_v42 = vsel %vm1125_vm1, %v1143_v37, %v1145_v43  ;;  %v1166_v44 = vrot.slane %v1134_v41, 6 }
 0x169   :  { %v1160_v45 = vrot.slane %v2961_v40, 6  ;;  %v1162_v47 = vrot.slane %v2964_v42, 6  ;;  %v1170_v48 = vrot.slane %v1145_v43, 6 }
 0x16a   :  { %v1086_v49 = vpop.f32.mrb[12].mxu0 }
 0x16b   :  { %v2969_v50 = vsel %vm1158_vm2, %v1160_v45, %v1166_v44  ;;  %v2972_v51 = vsel %vm1158_vm2, %v1162_v47, %v1170_v48  ;;  %v1100_v52 = vmax.f32 %v1076_v55, %v1086_v49  ;;  %v1088_v53 = vpop.f32.mrb[13].mxu0 }
 0x16c   :  { %v1101_v35 = vmax.f32 %v1078_v56, %v1088_v53  ;;  %v1090_v37 = vpop.f32.mrb[14].mxu0 }
 0x16d   :  { %v1102_v32 = vmax.f32 %v1080_v34, %v1090_v37  ;;  %v1092_v31 = vpop.f32.mrb[15].mxu0 }
 0x16e   :  { %v1116_v30 = vmax.f32 %v1100_v52, %v1101_v35  ;;  %v1103_v29 = vmax.f32 %v1082_v36, %v1092_v31 }
 0x170   :  { %v1118_v28 = vadd.f32 %v1977_v46, %v1116_v30  ;;  %v1117_v44 = vmax.f32 %v1102_v32, %v1103_v29 }
 0x172   :  { %v1120_v27 = vmax.f32 %v1118_v28, 0.0  ;;  %v1119_v26 = vadd.f32 %v1977_v46, %v1117_v44 }
 0x174   :  { %v1121_v48 = vmax.f32 %v1119_v26, 0.0  ;;  %v1138_v25 = vrot.slane %v1120_v27, 1  ;;  %v1148_v55 = vrot.slane %v1120_v27, 2 }
 0x176   :  { %v1128_v49 = vrot.slane %v1121_v48, 3  ;;  %v1140_v16 = vrot.slane %v1121_v48, 4  ;;  %v1150_v24 = vrot.slane %v1121_v48, 5 }
 0x178   :  { %v1130_v54 = vsel %vm1125_vm1, %v1120_v27, %v1128_v49  ;;  %v2980_v33 = vsel %vm1125_vm1, %v1138_v25, %v1140_v16  ;;  %v1152_v56 = vsel %vm1125_vm1, %v1148_v55, %v1150_v24  ;;  %v1164_v34 = vrot.slane %v1128_v49, 6 }
 0x179   :  { %v1159_v52 = vrot.slane %v1130_v54, 6  ;;  %v1161_v30 = vrot.slane %v2980_v33, 6  ;;  %v1163_v29 = vrot.slane %v1152_v56, 6  ;;  %v1168_v28 = vrot.slane %v1140_v16, 6 }
 0x17a   :  { %v1172_v31 = vrot.slane %v1150_v24, 6  ;;  %v1185_v26 = vsel %vm1158_vm2, %v1128_v49, %v1160_v45  ;;  %v2986_v32 = vsel %vm1158_vm2, %v1140_v16, %v1162_v47 }
 0x17b   :  { %v2989_v46 = vsel %vm1158_vm2, %v1159_v52, %v1164_v34  ;;  %v2992_v25 = vsel %vm1158_vm2, %v1161_v30, %v1168_v28  ;;  %v2995_v27 = vsel %vm1158_vm2, %v1123_v38, %v1159_v52  ;;  %v2998_v36 = vsel %vm1158_vm2, %v1134_v41, %v1161_v30 }
 0x17c   :  { %v3001_v53 = vsel %vm1158_vm2, %v1163_v29, %v1172_v31  ;;  %v3004_v24 = vsel %vm1158_vm2, %v1145_v43, %v1163_v29  ;;  %v1189_v16 = vpack.c.bf16 %v2995_v27, %v2958_v39  ;;  %v1190_v45 = vpack.c.bf16 %v1185_v26, %v1130_v54 }
 0x17d   :  { %v1191_v47 = vpack.c.bf16 %v2998_v36, %v2961_v40  ;;  %v1192_v38 = vpack.c.bf16 %v2986_v32, %v2980_v33  ;;  %v1193_v41 = vpack.c.bf16 %v3004_v24, %v2964_v42  ;;  %v1194_v35 = vpack.c.bf16 %v2989_v46, %v2989_v46 }
 0x17e   :  { %v1196_v43 = vpack.c.bf16 %v2992_v25, %v2992_v25  ;;  %v1198_v37 = vpack.c.bf16 %v3001_v53, %v3001_v53 }
 0x17f   :  { %2233 = dma.done.wait [#allocation4], 10240 }
 0x180   :  { %2234 = vsyncadd [#allocation4], 4294957056  ;;  %1315 = vmatprep.mubr.bf16.mxu1 %v1190_v45  ;;  %v1204_v54 = vld [vmem:[#allocation2 + $0x8] sm:$0xff]  ;;  %v1203_v44 = vld [vmem:[#allocation2] sm:$0xff]  ;;  %vm1440_vm3 = vcmask 1045504   ;;  %vm1488_vm4 = vcmask 1040384   ;;  %2002 = vmatprep.subr.bf16.mxu0 %v2709_v1 }
 0x181   :  { %v1206_v48 = vld [vmem:[#allocation2 + $0x18] sm:$0xff]  ;;  %1283 = vmatprep.subr.bf16.mxu1 %v1204_v54  ;;  %v1205_v55 = vld [vmem:[#allocation2 + $0x10] sm:$0xff]  ;;  %v1208_v49 = vld [vmem:[#allocation2 + $0x28] sm:$0xff] }
 0x182   :  { %1284 = vmatpush1.bf16.msra.mxu1 %v1203_v44  ;;  %v1207_v56 = vld [vmem:[#allocation2 + $0x20] sm:$0xff]  ;;  %v1210_v34 = vld [vmem:[#allocation2 + $0x38] sm:$0xff]  ;;  %v1209_v52 = vld [vmem:[#allocation2 + $0x30] sm:$0xff] }
 0x183   :  { %1285 = vmatprep.subr.bf16.mxu1 %v1206_v48  ;;  %v1212_v30 = vld [vmem:[#allocation2 + $0x48] sm:$0xff]  ;;  %v1211_v29 = vld [vmem:[#allocation2 + $0x40] sm:$0xff]  ;;  %v1214_v28 = vld [vmem:[#allocation2 + $0x58] sm:$0xff] }
 0x184   :  { %v1213_v31 = vld [vmem:[#allocation2 + $0x50] sm:$0xff]  ;;  %v1216_v26 = vld [vmem:[#allocation2 + $0x68] sm:$0xff]  ;;  %v1215_v45 = vld [vmem:[#allocation2 + $0x60] sm:$0xff] }
 0x185   :  { %v1218_v54 = vld [vmem:[#allocation2 + $0x78] sm:$0xff]  ;;  %v1217_v44 = vld [vmem:[#allocation2 + $0x70] sm:$0xff]  ;;  %v1220_v48 = vld [vmem:[#allocation2 + $0x88] sm:$0xff] }
 0x186   :  { %1286 = vmatpush1.bf16.msra.mxu1 %v1205_v55  ;;  %v1219_v55 = vld [vmem:[#allocation2 + $0x80] sm:$0xff]  ;;  %v1241_v39 = vld [vmem:[#allocation2 + $0x130] sm:$0xff]  ;;  %v1252_v33 = vld [vmem:[#allocation2 + $0x188] sm:$0xff] }
 0x187   :  { %1287 = vmatprep.subr.bf16.mxu1 %v1208_v49  ;;  %v1222_v49 = vld [vmem:[#allocation2 + $0x98] sm:$0xff]  ;;  %v1243_v27 = vld [vmem:[#allocation2 + $0x140] sm:$0xff]  ;;  %v1273_v40 = vld [vmem:[#allocation2 + $0x230] sm:$0xff] }
 0x188   :  { %v1247_v46 = vld [vmem:[#allocation2 + $0x160] sm:$0xff]  ;;  %v1276_v36 = vld [vmem:[#allocation2 + $0x248] sm:$0xff]  ;;  %v1281_v25 = vld [vmem:[#allocation2 + $0x270] sm:$0xff] }
 0x189   :  { %v1251_v32 = vld [vmem:[#allocation2 + $0x180] sm:$0xff] }
 0x18a   :  { %1288 = vmatpush1.bf16.msra.mxu1 %v1207_v56  ;;  %v1221_v56 = vld [vmem:[#allocation2 + $0x90] sm:$0xff] }
 0x18b   :  { %1289 = vmatprep.subr.bf16.mxu1 %v1210_v34  ;;  %v1224_v34 = vld [vmem:[#allocation2 + $0xa8] sm:$0xff] }
 0x18e   :  { %1290 = vmatpush1.bf16.msra.mxu1 %v1209_v52  ;;  %v1223_v52 = vld [vmem:[#allocation2 + $0xa0] sm:$0xff] }
 0x18f   :  { %1291 = vmatprep.subr.bf16.mxu1 %v1212_v30  ;;  %v1226_v30 = vld [vmem:[#allocation2 + $0xb8] sm:$0xff] }
 0x192   :  { %1292 = vmatpush1.bf16.msra.mxu1 %v1211_v29  ;;  %v1225_v29 = vld [vmem:[#allocation2 + $0xb0] sm:$0xff] }
 0x193   :  { %1293 = vmatprep.subr.bf16.mxu1 %v1214_v28  ;;  %v1228_v28 = vld [vmem:[#allocation2 + $0xc8] sm:$0xff] }
 0x196   :  { %1294 = vmatpush1.bf16.msra.mxu1 %v1213_v31  ;;  %v1227_v31 = vld [vmem:[#allocation2 + $0xc0] sm:$0xff] }
 0x197   :  { %1295 = vmatprep.subr.bf16.mxu1 %v1216_v26  ;;  %v1230_v26 = vld [vmem:[#allocation2 + $0xd8] sm:$0xff] }
 0x19a   :  { %1296 = vmatpush1.bf16.msra.mxu1 %v1215_v45  ;;  %v1229_v45 = vld [vmem:[#allocation2 + $0xd0] sm:$0xff] }
 0x19b   :  { %1297 = vmatprep.subr.bf16.mxu1 %v1218_v54  ;;  %v1232_v54 = vld [vmem:[#allocation2 + $0xe8] sm:$0xff] }
 0x19e   :  { %1298 = vmatpush1.bf16.msra.mxu1 %v1217_v44  ;;  %v1231_v44 = vld [vmem:[#allocation2 + $0xe0] sm:$0xff] }
 0x19f   :  { %1299 = vmatprep.subr.bf16.mxu1 %v1220_v48  ;;  %v1234_v48 = vld [vmem:[#allocation2 + $0xf8] sm:$0xff] }
 0x1a2   :  { %1300 = vmatpush1.bf16.msra.mxu1 %v1219_v55  ;;  %v1233_v55 = vld [vmem:[#allocation2 + $0xf0] sm:$0xff] }
 0x1a3   :  { %1301 = vmatprep.subr.bf16.mxu1 %v1222_v49  ;;  %v1236_v49 = vld [vmem:[#allocation2 + $0x108] sm:$0xff] }
 0x1a6   :  { %1302 = vmatpush1.bf16.msra.mxu1 %v1221_v56  ;;  %v1235_v56 = vld [vmem:[#allocation2 + $0x100] sm:$0xff] }
 0x1a7   :  { %1303 = vmatprep.subr.bf16.mxu1 %v1224_v34  ;;  %v1238_v34 = vld [vmem:[#allocation2 + $0x118] sm:$0xff] }
 0x1aa   :  { %1304 = vmatpush1.bf16.msra.mxu1 %v1223_v52  ;;  %v3215_v52 = vpack.c.bf16 %v2969_v50, %v2969_v50  ;;  %v1244_v50 = vld [vmem:[#allocation2 + $0x148] sm:$0xff] }
 0x1ab   :  { %1305 = vmatprep.subr.bf16.mxu1 %v1226_v30  ;;  %v1237_v30 = vld [vmem:[#allocation2 + $0x110] sm:$0xff] }
 0x1ae   :  { %1306 = vmatpush1.bf16.msra.mxu1 %v1225_v29  ;;  %v1240_v29 = vld [vmem:[#allocation2 + $0x128] sm:$0xff] }
 0x1af   :  { %1307 = vmatprep.subr.bf16.mxu1 %v1228_v28  ;;  %v1239_v28 = vld [vmem:[#allocation2 + $0x120] sm:$0xff] }
 0x1b2   :  { %1308 = vmatpush1.bf16.msra.mxu1 %v1227_v31  ;;  %v1242_v31 = vld [vmem:[#allocation2 + $0x138] sm:$0xff] }
 0x1b3   :  { %1309 = vmatprep.subr.bf16.mxu1 %v1230_v26  ;;  %v1245_v26 = vld [vmem:[#allocation2 + $0x150] sm:$0xff] }
 0x1b6   :  { %1310 = vmatpush1.bf16.msra.mxu1 %v1229_v45  ;;  %v1248_v45 = vld [vmem:[#allocation2 + $0x168] sm:$0xff] }
 0x1b7   :  { %1311 = vmatprep.subr.bf16.mxu1 %v1232_v54  ;;  %v1249_v54 = vld [vmem:[#allocation2 + $0x170] sm:$0xff] }
 0x1ba   :  { %1312 = vmatpush1.bf16.msra.mxu1 %v1231_v44  ;;  %v1253_v44 = vld [vmem:[#allocation2 + $0x190] sm:$0xff] }
 0x1bb   :  { %1313 = vmatprep.subr.bf16.mxu1 %v1234_v48  ;;  %v1256_v48 = vld [vmem:[#allocation2 + $0x1a8] sm:$0xff] }
 0x1be   :  { %1314 = vmatpush1.bf16.msra.mxu1 %v1233_v55  ;;  %v1255_v55 = vld [vmem:[#allocation2 + $0x1a0] sm:$0xff] }
 0x1bf   :  { %1334 = vmatprep.subr.bf16.mxu1 %v1236_v49  ;;  %v1258_v49 = vld [vmem:[#allocation2 + $0x1b8] sm:$0xff] }
 0x1c1   :  { %1316 = vmatmul.mubr.bf16.vlgmr.msra.gmra.mrb[0].mxu1 %v1189_v16  ;;  %v1246_v16 = vld [vmem:[#allocation2 + $0x158] sm:$0xff] }
 0x1c2   :  { %1335 = vmatpush1.bf16.msra.mxu1 %v1235_v56  ;;  %1325 = vmatprep.mubr.bf16.mxu1 %v3215_v52  ;;  %v1257_v56 = vld [vmem:[#allocation2 + $0x1b0] sm:$0xff]  ;;  %v1259_v52 = vld [vmem:[#allocation2 + $0x1c0] sm:$0xff] }
 0x1c3   :  { %1336 = vmatprep.subr.bf16.mxu1 %v1238_v34  ;;  %v1260_v34 = vld [vmem:[#allocation2 + $0x1c8] sm:$0xff] }
 0x1c6   :  { %1337 = vmatpush1.bf16.msra.mxu1 %v1237_v30  ;;  %v1262_v30 = vld [vmem:[#allocation2 + $0x1d8] sm:$0xff] }
 0x1c7   :  { %1338 = vmatprep.subr.bf16.mxu1 %v1240_v29  ;;  %v1261_v29 = vld [vmem:[#allocation2 + $0x1d0] sm:$0xff] }
 0x1c9   :  { %1326 = vmatmul.mubr.bf16.gmra.mrb[4].mxu1 %v1194_v35  ;;  %v1250_v35 = vld [vmem:[#allocation2 + $0x178] sm:$0xff] }
 0x1ca   :  { %1339 = vmatpush1.bf16.msra.mxu1 %v1239_v28  ;;  %1366 = vmatprep.mubr.bf16.mxu1 %v1192_v38  ;;  %v1254_v38 = vld [vmem:[#allocation2 + $0x198] sm:$0xff]  ;;  %v1264_v28 = vld [vmem:[#allocation2 + $0x1e8] sm:$0xff] }
 0x1cb   :  { %1340 = vmatprep.subr.bf16.mxu1 %v1242_v31  ;;  %v1263_v31 = vld [vmem:[#allocation2 + $0x1e0] sm:$0xff] }
 0x1ce   :  { %1341 = vmatpush1.bf16.msra.mxu1 %v1241_v39  ;;  %v1266_v39 = vld [vmem:[#allocation2 + $0x1f8] sm:$0xff] }
 0x1cf   :  { %1342 = vmatprep.subr.bf16.mxu1 %v1244_v50  ;;  %v1265_v50 = vld [vmem:[#allocation2 + $0x1f0] sm:$0xff] }
 0x1d2   :  { %1343 = vmatpush1.bf16.msra.mxu1 %v1243_v27  ;;  %v1268_v27 = vld [vmem:[#allocation2 + $0x208] sm:$0xff] }
 0x1d3   :  { %1344 = vmatprep.subr.bf16.mxu1 %v1246_v16  ;;  %v1267_v16 = vld [vmem:[#allocation2 + $0x200] sm:$0xff] }
 0x1d6   :  { %1345 = vmatpush1.bf16.msra.mxu1 %v1245_v26  ;;  %v1270_v26 = vld [vmem:[#allocation2 + $0x218] sm:$0xff] }
 0x1d7   :  { %1346 = vmatprep.subr.bf16.mxu1 %v1248_v45  ;;  %v3216_v45 = vpack.c.bf16 %v2972_v51, %v2972_v51  ;;  %v1275_v51 = vld [vmem:[#allocation2 + $0x240] sm:$0xff] }
 0x1da   :  { %1347 = vmatpush1.bf16.msra.mxu1 %v1247_v46  ;;  %v1269_v46 = vld [vmem:[#allocation2 + $0x210] sm:$0xff] }
 0x1db   :  { %1348 = vmatprep.subr.bf16.mxu1 %v1250_v35  ;;  %v1272_v35 = vld [vmem:[#allocation2 + $0x228] sm:$0xff] }
 0x1de   :  { %1349 = vmatpush1.bf16.msra.mxu1 %v1249_v54  ;;  %v1271_v54 = vld [vmem:[#allocation2 + $0x220] sm:$0xff] }
 0x1df   :  { %1350 = vmatprep.subr.bf16.mxu1 %v1252_v33  ;;  %v1274_v33 = vld [vmem:[#allocation2 + $0x238] sm:$0xff] }
 0x1e2   :  { %1351 = vmatpush1.bf16.msra.mxu1 %v1251_v32  ;;  %v2239_v32 = vmov 0  }
 0x1e3   :  { %1352 = vmatprep.subr.bf16.mxu1 %v1254_v38  ;;  %v1277_v38 = vld [vmem:[#allocation2 + $0x250] sm:$0xff] }
 0x1e6   :  { %1353 = vmatpush1.bf16.msra.mxu1 %v1253_v44  ;;  %v1280_v44 = vld [vmem:[#allocation2 + $0x268] sm:$0xff] }
 0x1e7   :  { %1354 = vmatprep.subr.bf16.mxu1 %v1256_v48  ;;  %v1279_v48 = vld [vmem:[#allocation2 + $0x260] sm:$0xff] }
 0x1ea   :  { %1355 = vmatpush1.bf16.msra.mxu1 %v1255_v55  ;;  %v1282_v55 = vld [vmem:[#allocation2 + $0x278] sm:$0xff] }
 0x1eb   :  { %1356 = vmatprep.subr.bf16.mxu1 %v1258_v49 }
 0x1ee   :  { %1357 = vmatpush1.bf16.msra.mxu1 %v1257_v56 }
 0x1ef   :  { %1358 = vmatprep.subr.bf16.mxu1 %v1260_v34 }
 0x1f2   :  { %1359 = vmatpush1.bf16.msra.mxu1 %v1259_v52 }
 0x1f3   :  { %1360 = vmatprep.subr.bf16.mxu1 %v1262_v30 }
 0x1f6   :  { %1361 = vmatpush1.bf16.msra.mxu1 %v1261_v29 }
 0x1f7   :  { %1362 = vmatprep.subr.bf16.mxu1 %v1264_v28 }
 0x1fa   :  { %1363 = vmatpush1.bf16.msra.mxu1 %v1263_v31 }
 0x1fb   :  { %1364 = vmatprep.subr.bf16.mxu1 %v1266_v39 }
 0x1fe   :  { %1365 = vmatpush1.bf16.msra.mxu1 %v1265_v50 }
 0x1ff   :  { %1385 = vmatprep.subr.bf16.mxu1 %v1268_v27 }
 0x201   :  { %1367 = vmatmul.mubr.bf16.vlgmr.msra.gmra.mrb[0].mxu1 %v1191_v47  ;;  %v1278_v47 = vld [vmem:[#allocation2 + $0x258] sm:$0xff] }
 0x202   :  { %1386 = vmatpush1.bf16.msra.mxu1 %v1267_v16  ;;  %1376 = vmatprep.mubr.bf16.mxu1 %v3216_v45 }
 0x203   :  { %1387 = vmatprep.subr.bf16.mxu1 %v1270_v26 }
 0x206   :  { %1388 = vmatpush1.bf16.msra.mxu1 %v1269_v46 }
 0x207   :  { %1389 = vmatprep.subr.bf16.mxu1 %v1272_v35 }
 0x209   :  { %1377 = vmatmul.mubr.bf16.gmra.mrb[4].mxu1 %v1196_v43 }
 0x20a   :  { %1390 = vmatpush1.bf16.msra.mxu1 %v1271_v54  ;;  %1417 = vmatprep.mubr.bf16.mxu1 %v2239_v32 }
 0x20b   :  { %1391 = vmatprep.subr.bf16.mxu1 %v1274_v33 }
 0x20e   :  { %1392 = vmatpush1.bf16.msra.mxu1 %v1273_v40 }
 0x20f   :  { %1393 = vmatprep.subr.bf16.mxu1 %v1276_v36 }
 0x212   :  { %1394 = vmatpush1.bf16.msra.mxu1 %v1275_v51 }
 0x213   :  { %1395 = vmatprep.subr.bf16.mxu1 %v1278_v47 }
 0x216   :  { %1396 = vmatpush1.bf16.msra.mxu1 %v1277_v38 }
 0x217   :  { %1397 = vmatprep.subr.bf16.mxu1 %v1280_v44 }
 0x21a   :  { %1398 = vmatpush1.bf16.msra.mxu1 %v1279_v48 }
 0x21b   :  { %1399 = vmatprep.subr.bf16.mxu1 %v1282_v55 }
 0x21e   :  { %1400 = vmatpush1.bf16.msra.mxu1 %v1281_v25 }
 0x221   :  { %1418 = vmatmul.mubr.bf16.vlgmr.msra.gmra.mrb[0].mxu1 %v1193_v41 }
 0x222   :  { %1427 = vmatprep.mubr.bf16.mxu1 %v2239_v32 }
 0x229   :  { %1428 = vmatmul.mubr.bf16.gmra.mrb[4].mxu1 %v1198_v37  ;;  %v1978_v37 = vld [vmem:[%s3197_s4] ss:$0 sm:$0xff] }
 0x2f4   :  { %v1419_v43 = vpop.f32.mrb[0].mxu1 }
 0x2f5   :  { %v1421_v49 = vpop.f32.mrb[1].mxu1 }
 0x2f6   :  { %v1423_v56 = vpop.f32.mrb[2].mxu1 }
 0x2f7   :  { %v1425_v34 = vpop.f32.mrb[3].mxu1  ;;  %v1441_v30 = vrot.slane %v1423_v56, 2 }
 0x2f8   :  { %v1444_v31 = vrot.slane %v1425_v34, 2 }
 0x2fc   :  { %v1429_v52 = vpop.f32.mrb[4].mxu1 }
 0x2fd   :  { %v1442_v29 = vrot.slane %v1429_v52, 2  ;;  %v1431_v28 = vpop.f32.mrb[5].mxu1 }
 0x2fe   :  { %v1445_v39 = vrot.slane %v1431_v28, 2  ;;  %v1433_v50 = vpop.f32.mrb[6].mxu1 }
 0x2ff   :  { %v1443_v27 = vsel %vm1440_vm3, %v1441_v30, %v1442_v29  ;;  %v1453_v42 = vmax.f32 %v1423_v56, %v1442_v29  ;;  %v1434_v24 = vpop.f32.mrb[7].mxu1 }
 0x300   :  { %v1451_v41 = vmax.f32 %v1419_v43, %v1443_v27  ;;  %v1446_v16 = vsel %vm1440_vm3, %v1444_v31, %v1445_v39  ;;  %v1454_v26 = vmax.f32 %v1425_v34, %v1445_v39 }
 0x301   :  { %v1452_v53 = vmax.f32 %v1421_v49, %v1446_v16 }
 0x302   :  { %v1456_v45 = vmax.f32 %v1453_v42, %v1454_v26 }
 0x303   :  { %v1455_v46 = vmax.f32 %v1451_v41, %v1452_v53 }
 0x304   :  { %v1465_v35 = vadd.f32 %v1978_v37, %v1456_v45 }
 0x305   :  { %v1464_v54 = vadd.f32 %v1978_v37, %v1455_v46 }
 0x306   :  { %v1467_v33 = vmax.f32 %v1465_v35, 0.0 }
 0x307   :  { %v1466_v32 = vmax.f32 %v1464_v54, 0.0 }
 0x308   :  { %v1979_v40 = vrot.slane %v1467_v33, 7 }
 0x309   :  { %v1469_v36 = vrot.slane %v1466_v32, 1  ;;  %v1471_v51 = vrot.slane %v1466_v32, 2  ;;  %v1473_v47 = vrot.slane %v1466_v32, 3  ;;  %v1475_v38 = vrot.slane %v1466_v32, 4 }
 0x30b   :  { %v1480_v44 = vrot.slane %v1469_v36, 4  ;;  %v1481_v48 = vrot.slane %v1471_v51, 4  ;;  %v1489_v55 = vsel %vm1488_vm4, %v1466_v32, %v1475_v38  ;;  %v1492_v25 = vsel %vm1488_vm4, %v1473_v47, %v1979_v40 }
 0x30c   :  { %v3050_v43 = vsel %vm1488_vm4, %v1475_v38, %v1467_v33  ;;  %v1494_v49 = vpack.c.bf16 %v1489_v55, %v1489_v55  ;;  %v1497_v56 = vpack.c.bf16 %v1492_v25, %v1492_v25 }
 0x30d   :  { %v1490_v34 = vsel %vm1488_vm4, %v1469_v36, %v1480_v44  ;;  %v1491_v52 = vsel %vm1488_vm4, %v1471_v51, %v1481_v48  ;;  %v1498_v30 = vpack.c.bf16 %v3050_v43, %v3050_v43 }
 0x30e   :  { %v1495_v29 = vpack.c.bf16 %v1490_v34, %v1490_v34  ;;  %v1496_v28 = vpack.c.bf16 %v1491_v52, %v1491_v52 }
 0x310   :  { %1581 = vmatprep.mubr.bf16.mxu0 %v1495_v29 }
 0x311   :  { %2235 = dma.done.wait [#allocation4 + $0x1], 5120 }
 0x312   :  { %2236 = vsyncadd [#allocation4 + $0x1], 4294962176  ;;  %2003 = vmatpush3.bf16.msra.mxu0 %v2669_v57  ;;  %v2240_v31 = vmov 0.0   ;;  %vm2241_vm5 = vmmov 0   ;;  %v3217_v57 = vld [vmem:[#allocation13_spill] sm:$0xff]  ;;  %v3225_v1 = vld [vmem:[#allocation20_spill] sm:$0xff] }
 0x313   :  { %2113 = vmatprep.subr.bf16.mxu1 %v2240_v31  ;;  %2004 = vmatprep.subr.bf16.mxu0 %v2714_v2  ;;  %v3226_v2 = vld [vmem:[#allocation21_spill] sm:$0xff]  ;;  %v2210_v32 = vld [vmem:[%s3202_s9 + $0x38] sm:$0xff]   ;;  %v1982_v40 = vld [vmem:[%s3201_s8] ss:$0 sm:$0xff]  ;;  %s2242_s16 = smov [#allocation5]  }
 0x314   :  { %2129 = vmatprep.mubr.msk.bf16.mxu1 %vm2241_vm5, %v2240_v31  ;;  %v2209_v33 = vld [vmem:[%s3202_s9 + $0x30] sm:$0xff]   ;;  %v1991_v25 = vld [vmem:[%s3203_s10] ss:$0 sm:$0xff]  ;;  %s1902_s17 = sshll.u32 %s2242_s16, 4  ;;  %s1903_s17 = int_to_ptr.vmem [resolvable:$true] %s1902_s17 }
 0x315   :  { %s2211_s8 = scalar_lea.vmem %s1903_s17, 32  ;;  %p2216_p1 = scmp.lt.s32.totalorder %s1903_s17, %s1903_s17 }
 0x316   :  { %2005 = vmatpush3.bf16.msra.mxu0 %v2674_v58  ;;  %v3218_v58 = vld [vmem:[#allocation12_spill] sm:$0xff]  ;;  %p2212_p0 = scmp.ne.s32.totalorder %s1903_s17, %s2211_s8  ;;  %p2217_p2 = scmp.lt.s32.totalorder %s2211_s8, %s2211_s8 }
 0x317   :  { %2006 = vmatprep.subr.bf16.mxu0 %v2719_v3  ;;  %v2195_v3 = vld [vmem:[%s3200_s7] sm:$0xff]  }
 0x318   :  { %p2218_p3 = por %p2217_p2, %p2216_p1 }
 0x31a   :  { %2007 = vmatpush3.bf16.msra.mxu0 %v2679_v59  ;;  %v3219_v59 = vld [vmem:[#allocation14_spill] sm:$0xff]  ;;  %p2219_p4 = pnand %p2218_p3, %p2212_p0 }
 0x31b   :  { %2008 = vmatprep.subr.bf16.mxu0 %v2724_v4  ;;  %v2196_v4 = vld [vmem:[%s3200_s7 + $0x8] sm:$0xff]  }
 0x31e   :  { %2009 = vmatpush3.bf16.msra.mxu0 %v2684_v60  ;;  %v3220_v60 = vld [vmem:[#allocation15_spill] sm:$0xff] }
 0x31f   :  { %2010 = vmatprep.subr.bf16.mxu0 %v2729_v5  ;;  %v2197_v5 = vld [vmem:[%s3200_s7 + $0x10] sm:$0xff]  }
 0x322   :  { %2011 = vmatpush3.bf16.msra.mxu0 %v2689_v61  ;;  %v3221_v61 = vld [vmem:[#allocation16_spill] sm:$0xff] }
 0x323   :  { %2012 = vmatprep.subr.bf16.mxu0 %v2734_v6  ;;  %v2198_v6 = vld [vmem:[%s3200_s7 + $0x18] sm:$0xff]  }
 0x326   :  { %2013 = vmatpush3.bf16.msra.mxu0 %v2694_v62  ;;  %v3222_v62 = vld [vmem:[#allocation17_spill] sm:$0xff] }
 0x327   :  { %2014 = vmatprep.subr.bf16.mxu0 %v2739_v7  ;;  %v2199_v7 = vld [vmem:[%s3200_s7 + $0x20] sm:$0xff]  }
 0x32a   :  { %2015 = vmatpush3.bf16.msra.mxu0 %v2699_v63  ;;  %v3223_v63 = vld [vmem:[#allocation18_spill] sm:$0xff] }
 0x32b   :  { %2016 = vmatprep.subr.bf16.mxu0 %v2744_v8  ;;  %v2200_v8 = vld [vmem:[%s3200_s7 + $0x28] sm:$0xff]  }
 0x32e   :  { %2017 = vmatpush3.bf16.msra.mxu0 %v2704_v0  ;;  %v3224_v0 = vld [vmem:[#allocation19_spill] sm:$0xff] }
 0x32f   :  { %2024 = vmatprep.subr.bf16.mxu0 %v2789_v17  ;;  %v2208_v17 = vld [vmem:[%s3202_s9 + $0x28] sm:$0xff]  }
 0x331   :  { %1582 = vmatmul.mubr.bf16.vlgmr.msra.gmra.mrb[16].mxu0 %v1494_v49 }
 0x332   :  { %2025 = vmatpush3.bf16.msra.mxu0 %v2749_v9  ;;  %1621 = vmatprep.mubr.bf16.mxu0 %v1497_v56  ;;  %v2201_v9 = vld [vmem:[%s3200_s7 + $0x30] sm:$0xff]  }
 0x333   :  { %2026 = vmatprep.subr.bf16.mxu0 %v2794_v18 }
 0x336   :  { %2027 = vmatpush3.bf16.msra.mxu0 %v2754_v10  ;;  %v2202_v10 = vld [vmem:[%s3200_s7 + $0x38] sm:$0xff]  }
 0x337   :  { %2028 = vmatprep.subr.bf16.mxu0 %v2799_v19 }
 0x33a   :  { %2029 = vmatpush3.bf16.msra.mxu0 %v2759_v11  ;;  %v2203_v11 = vld [vmem:[%s3202_s9] sm:$0xff]  }
 0x33b   :  { %2030 = vmatprep.subr.bf16.mxu0 %v2804_v20  ;;  %2114 = vmatpush3.bf16.msra.mxu1 %v2203_v11 }
 0x33c   :  { %2115 = vmatprep.subr.bf16.mxu1 %v2240_v31 }
 0x33e   :  { %2031 = vmatpush3.bf16.msra.mxu0 %v2764_v12  ;;  %v2204_v12 = vld [vmem:[%s3202_s9 + $0x8] sm:$0xff]  }
 0x33f   :  { %2032 = vmatprep.subr.bf16.mxu0 %v2809_v21  ;;  %2116 = vmatpush3.bf16.msra.mxu1 %v2204_v12 }
 0x340   :  { %2117 = vmatprep.subr.bf16.mxu1 %v2240_v31 }
 0x342   :  { %2033 = vmatpush3.bf16.msra.mxu0 %v2769_v13  ;;  %v2205_v13 = vld [vmem:[%s3202_s9 + $0x10] sm:$0xff]  }
 0x343   :  { %2034 = vmatprep.subr.bf16.mxu0 %v2814_v22  ;;  %2118 = vmatpush3.bf16.msra.mxu1 %v2205_v13 }
 0x344   :  { %2119 = vmatprep.subr.bf16.mxu1 %v2240_v31 }
 0x346   :  { %2035 = vmatpush3.bf16.msra.mxu0 %v2774_v14  ;;  %v2206_v14 = vld [vmem:[%s3202_s9 + $0x18] sm:$0xff]  }
 0x347   :  { %2036 = vmatprep.subr.bf16.mxu0 %v2819_v23  ;;  %2120 = vmatpush3.bf16.msra.mxu1 %v2206_v14  ;;  %v1981_v23 = vld [vmem:[%s3199_s6] ss:$0 sm:$0xff] }
 0x348   :  { %2121 = vmatprep.subr.bf16.mxu1 %v2240_v31 }
 0x34a   :  { %2037 = vmatpush3.bf16.msra.mxu0 %v2779_v15  ;;  %v2207_v15 = vld [vmem:[%s3202_s9 + $0x20] sm:$0xff]  }
 0x34b   :  { %2038 = vmatprep.subr.bf16.mxu0 %v3217_v57  ;;  %2122 = vmatpush3.bf16.msra.mxu1 %v2207_v15 }
 0x34c   :  { %2123 = vmatprep.subr.bf16.mxu1 %v2240_v31 }
 0x34e   :  { %2039 = vmatpush3.bf16.msra.mxu0 %v3218_v58 }
 0x34f   :  { %2073 = vmatprep.subr.bf16.mxu0 %v2240_v31  ;;  %2124 = vmatpush3.bf16.msra.mxu1 %v2208_v17 }
 0x350   :  { %2125 = vmatprep.subr.bf16.mxu1 %v2240_v31 }
 0x351   :  { %1622 = vmatmul.mubr.bf16.vlgmr.msra.gmra.mrb[20].mxu0 %v1496_v28 }
 0x352   :  { %2074 = vmatpush3.bf16.msra.mxu0 %v3219_v59  ;;  %2089 = vmatprep.mubr.msk.bf16.mxu0 %vm2241_vm5, %v2240_v31 }
 0x353   :  { %2075 = vmatprep.subr.bf16.mxu0 %v2240_v31  ;;  %2126 = vmatpush3.bf16.msra.mxu1 %v2209_v33 }
 0x354   :  { %2127 = vmatprep.subr.bf16.mxu1 %v2240_v31 }
 0x356   :  { %2076 = vmatpush3.bf16.msra.mxu0 %v3220_v60 }
 0x357   :  { %2077 = vmatprep.subr.bf16.mxu0 %v2240_v31  ;;  %2128 = vmatpush3.bf16.msra.mxu1 %v2210_v32 }
 0x35a   :  { %2078 = vmatpush3.bf16.msra.mxu0 %v3221_v61 }
 0x35b   :  { %2079 = vmatprep.subr.bf16.mxu0 %v2240_v31 }
 0x35e   :  { %2080 = vmatpush3.bf16.msra.mxu0 %v3222_v62 }
 0x35f   :  { %2081 = vmatprep.subr.bf16.mxu0 %v2240_v31 }
 0x362   :  { %2082 = vmatpush3.bf16.msra.mxu0 %v3223_v63 }
 0x363   :  { %2083 = vmatprep.subr.bf16.mxu0 %v2240_v31 }
 0x366   :  { %2084 = vmatpush3.bf16.msra.mxu0 %v3224_v0 }
 0x367   :  { %2085 = vmatprep.subr.bf16.mxu0 %v2240_v31 }
 0x36a   :  { %2086 = vmatpush3.bf16.msra.mxu0 %v3225_v1 }
 0x36b   :  { %2087 = vmatprep.subr.bf16.mxu0 %v2240_v31 }
 0x36e   :  { %2088 = vmatpush3.bf16.msra.mxu0 %v3226_v2 }
 0x36f   :  { %2093 = vmatprep.subr.bf16.mxu0 %v2240_v31 }
 0x371   :  { %2090 = vmatmul.mubr.bf16.vlgmr.msra.gmra.mrb[24].mxu0 %v1498_v30 }
 0x372   :  { %2109 = vmatprep.mubr.msk.bf16.mxu0 %vm2241_vm5, %v2240_v31  ;;  %2094 = vmatpush3.bf16.msra.mxu0 %v2195_v3 }
 0x373   :  { %2095 = vmatprep.subr.bf16.mxu0 %v2240_v31 }
 0x376   :  { %2096 = vmatpush3.bf16.msra.mxu0 %v2196_v4 }
 0x377   :  { %2097 = vmatprep.subr.bf16.mxu0 %v2240_v31 }
 0x37a   :  { %2098 = vmatpush3.bf16.msra.mxu0 %v2197_v5 }
 0x37b   :  { %2099 = vmatprep.subr.bf16.mxu0 %v2240_v31 }
 0x37e   :  { %2100 = vmatpush3.bf16.msra.mxu0 %v2198_v6 }
 0x37f   :  { %2101 = vmatprep.subr.bf16.mxu0 %v2240_v31 }
 0x382   :  { %2102 = vmatpush3.bf16.msra.mxu0 %v2199_v7 }
 0x383   :  { %2103 = vmatprep.subr.bf16.mxu0 %v2240_v31 }
 0x386   :  { %2104 = vmatpush3.bf16.msra.mxu0 %v2200_v8 }
 0x387   :  { %2105 = vmatprep.subr.bf16.mxu0 %v2240_v31 }
 0x38a   :  { %2106 = vmatpush3.bf16.msra.mxu0 %v2201_v9 }
 0x38b   :  { %2107 = vmatprep.subr.bf16.mxu0 %v2240_v31 }
 0x38e   :  { %2108 = vmatpush3.bf16.msra.mxu0 %v2202_v10 }
 0x404   :  { %v2018_v18 = vpop.f32.mrb[16].mxu0 }
 0x405   :  { %v2019_v19 = vpop.f32.mrb[17].mxu0 }
 0x406   :  { %v2020_v20 = vadd.f32 %v2019_v19, %v2018_v18  ;;  %v2021_v21 = vpop.f32.mrb[18].mxu0 }
 0x407   :  { %v2022_v22 = vpop.f32.mrb[19].mxu0 }
 0x408   :  { %v1584_v27 = vadd.f32 %v2020_v20, %v1981_v23 }
 0x424   :  { %v2040_v39 = vpop.f32.mrb[20].mxu0 }
 0x425   :  { %v2041_v50 = vpop.f32.mrb[21].mxu0 }
 0x426   :  { %v2042_v42 = vadd.f32 %v2041_v50, %v2040_v39  ;;  %v2043_v24 = vpop.f32.mrb[22].mxu0 }
 0x427   :  { %v2044_v41 = vpop.f32.mrb[23].mxu0 }
 0x428   :  { %v1624_v16 = vadd.f32 %v2042_v42, %v1584_v27 }
 0x444   :  { %v1663_v26 = vpop.f32.mrb[24].mxu0 }
 0x445   :  { %v1664_v53 = vadd.f32 %v1663_v26, %v1624_v16  ;;  %v2091_v37 = vpop.f32.mrb[25].mxu0 }
 0x446   :  { %v1666_v45 = vpop.f32.mrb[26].mxu0 }
 0x447   :  { %v1669_v46 = vmax.f32 %v1664_v53, 0.0  ;;  %v2092_v35 = vpop.f32.mrb[27].mxu0 }
 0x449   :  { %v1670_v54 = vpack.c.bf16 %v1669_v46, %v1669_v46 }
 0x44b   :  { %2110 = vmatmul.mubr.bf16.vlgmr.msra.gmra.mrb[28].mxu0 %v1670_v54 }
 0x51e   :  { %v1776_v36 = vpop.f32.mrb[28].mxu0 }
 0x51f   :  { %v1777_v51 = vadd.f32 %v1982_v40, %v1776_v36  ;;  %v2111_v47 = vpop.f32.mrb[29].mxu0 }
 0x520   :  { %v1779_v38 = vpop.f32.mrb[30].mxu0 }
 0x521   :  { %v1782_v44 = vmax.f32 %v1777_v51, 0.0  ;;  %v2112_v48 = vpop.f32.mrb[31].mxu0 }
 0x523   :  { %v1783_v55 = vpack.c.bf16 %v1782_v44, %v1782_v44 }
 0x525   :  { %2130 = vmatmul.mubr.bf16.vlgmr.msra.gmra.mrb[8].mxu1 %v1783_v55 }
 0x5f8   :  { %v1889_v43 = vpop.f32.mrb[8].mxu1 }
 0x5f9   :  { %v1890_v49 = vadd.f32 %v1991_v25, %v1889_v43  ;;  %v2131_v56 = vpop.f32.mrb[9].mxu1 }
 0x5fa   :  { %v1892_v34 = vpop.f32.mrb[10].mxu1 }
 0x5fb   :  { %1895 = vst [vmem:[#allocation5] sm:$0x3] %v1890_v49  ;;  %v2132_v52 = vpop.f32.mrb[11].mxu1 }
 0x5fc   :  { %2222 = shalt.err (!%p2219_p4)
}
 0x5fd   :  { %s2223_s10 = scalar_lea.hbm %s3204_s11, 32 }
 0x5fe   :  { %p2224_p5 = scmp.ne.s32.totalorder %s3204_s11, %s2223_s10  ;;  %p2227_p6 = scmp.lt.u32.totalorder %s2223_s10, %s3204_s11 }
 0x600   :  { %p2229_p7 = pnand %p2227_p6, %p2224_p5 }
 0x602   :  { %2232 = shalt.err (!%p2229_p7)
}
 0x603   :  { %1905 = dma.vmem_to_hbm [thread:$0]  %s1903_s17, 32, %s3204_s11, [#allocation6]  }
 0x604   :  { %2237 = dma.done.wait [#allocation6], 32  }
 0x605   :  { %2238 = vsyncadd [#allocation6], 4294967264 }
 0x606   :  { %1909 = vsyncpa [#allocation6], 1 }
 0x607   :  { %1910 = vsyncmov [#allocation4] }
 0x60a   :  { %s1911_s22 = vpop.sfrf %1910 }
 0x60b   :  { %p2000_p8 = scmp.ne.s32.totalorder %s1911_s22, 0 }
 0x60d   :  { %1915 = shalt.err (%p2000_p8)  }
 0x60e   :  { %1917 = vsyncmov [#allocation4 + $0x1] }
 0x611   :  { %s1918_s23 = vpop.sfrf %1917 }
 0x612   :  { %p2001_p9 = scmp.ne.s32.totalorder %s1918_s23, 0 }
 0x614   :  { %1922 = shalt.err (%p2001_p9)  }

</bundles_post_ra>
